<compile_context>
chip_gen: v7x
topology: tpu7x:2x2x1
jax: 0.10.0
libtpu: 0.0.40
codegen_flags: <defaults>
</compile_context>

<pallas_src>
import math
import functools

import jax
import jax.numpy as jnp
import numpy as np
from jax import lax
from jax.experimental import pallas as pl
from jax.experimental.pallas import tpu as pltpu


_SQRT_HALF = 1.0 / math.sqrt(2.0)
# Abramowitz & Stegun 7.1.26 erf polynomial constants (max abs err ~1.5e-7) -- reproduces
# exact-erf nn.GELU semantics without relying on a native erf lowering in Mosaic.
_ERF_P = 0.3275911
_ERF_A = (0.254829592, -0.284496736, 1.421413741, -1.453152027, 1.061405429)
_NEG_BIG = -1e30


def _erf_poly(x, fast):
    a1, a2, a3, a4, a5 = _ERF_A
    sgn = jnp.where(x >= 0.0, 1.0, -1.0)
    ax = jnp.abs(x)
    u = 1.0 + _ERF_P * ax
    t = pl.reciprocal(u, approx=True) if fast else 1.0 / u     # EUP slot on fast path
    poly = ((((a5 * t + a4) * t + a3) * t + a2) * t + a1) * t
    return sgn * (1.0 - poly * jnp.exp(-ax * ax))


def _gelu_exact(x, fast):
    return 0.5 * x * (1.0 + _erf_poly(x * _SQRT_HALF, fast))


def _layer_norm(v, w, b, eps=1e-6):
    mu = jnp.mean(v, axis=-1, keepdims=True)
    var = jnp.mean((v - mu) ** 2, axis=-1, keepdims=True)
    return (v - mu) * lax.rsqrt(var + eps) * w + b


def encoder_block_kernel(x_ref, ln1w_ref, ln1b_ref,
                         wqkv_ref, bqkv_ref, wo_ref, bo_ref,
                         ln2w_ref, ln2b_ref,
                         w1_ref, b1_ref, w2_ref, b2_ref,
                         out_ref,
                         qkv_scr, attn_scr,
                         *, num_heads, seq_valid, mlp_chunk, fast):
    x = x_ref[...]                                    # (BT, S, D) f32
    bt, seq, dim = x.shape
    hd = dim // num_heads
    cd = wqkv_ref.dtype                               # MXU operand (compute) dtype

    # Fold the batch tile into the sublane (M) dimension for all dense matmuls.
    x2d = x.reshape(bt * seq, dim)

    # --- LayerNorm 1 (f32) + fused QKV projection (one wide MXU matmul), staged in VMEM ---
    xn = _layer_norm(x2d, ln1w_ref[0], ln1b_ref[0])
    qkv_scr[...] = jnp.dot(xn.astype(cd), wqkv_ref[...],
                           preferred_element_type=jnp.float32) + bqkv_ref[0]   # (BT*S, 3D) f32

    need_mask = seq_valid < seq                       # static: mask padded key columns
    if need_mask:
        key_valid = lax.broadcasted_iota(jnp.int32, (seq, seq), 1) < seq_valid

    # --- Multi-head self attention ---
    # Each head's (S, hd) output goes to its lane offset in attn_scr (cheap vst, slack slot);
    # the output projection is ONE lane-packed (bt*S, D) @ (D, D) matmul afterwards
    # (K = D, not K = head_dim per head -> full MXU depth on 256-wide v6e/v7x).
    for b in range(bt):                               # static unroll; batch_tile kept small
        r0 = b * seq
        for h in range(num_heads):
            # TODO(synk): at real ViT sizes (12 heads x bt) convert this to lax.fori_loop with
            # pl.ds lane slices to bound live ranges / codegen size.
            c = h * hd
            qh = qkv_scr[r0:r0 + seq, c:c + hd]                    # 1/sqrt(hd) pre-folded in Wq
            kh = qkv_scr[r0:r0 + seq, dim + c:dim + c + hd]
            vh = qkv_scr[r0:r0 + seq, 2 * dim + c:2 * dim + c + hd]
            s = jnp.dot(qh.astype(cd), kh.astype(cd).T,
                        preferred_element_type=jnp.float32)        # (S, S)
            if need_mask:
                s = jnp.where(key_valid, s, _NEG_BIG)
            s = s - jnp.max(s, axis=-1, keepdims=True)
            p = jnp.exp(s)
            denom = jnp.sum(p, axis=-1, keepdims=True)
            if fast:
                p = p * pl.reciprocal(denom, approx=True)          # EUP slot, ~free
            else:
                p = p / denom
            attn_scr[r0:r0 + seq, c:c + hd] = jnp.dot(
                p.astype(cd), vh.astype(cd), preferred_element_type=jnp.float32)

    attn = jnp.dot(attn_scr[...].astype(cd), wo_ref[...],
                   preferred_element_type=jnp.float32) + bo_ref[0]

    # dropout -> identity (eval); first residual
    x1 = attn + x2d

    # --- LayerNorm 2 + MLP (Linear -> GELU(exact erf) -> Linear), tiled over mlp_dim ---
    y = _layer_norm(x1, ln2w_ref[0], ln2b_ref[0]).astype(cd)
    b1 = b1_ref[0]
    mlp_dim = w1_ref.shape[1]
    h2 = jnp.zeros((bt * seq, dim), jnp.float32)
    for n0 in range(0, mlp_dim, mlp_chunk):           # static chunk loop bounds live f32 h1
        n1 = min(n0 + mlp_chunk, mlp_dim)
        h1 = jnp.dot(y, w1_ref[:, n0:n1],
                     preferred_element_type=jnp.float32) + b1[n0:n1]
        h1 = _gelu_exact(h1, fast)
        h2 = h2 + jnp.dot(h1.astype(cd), w2_ref[n0:n1, :],
                          preferred_element_type=jnp.float32)
    h2 = h2 + b2_ref[0]

    out_ref[...] = (x1 + h2).reshape(bt, seq, dim).astype(out_ref.dtype)   # second residual


def _default_vmem_limit():
    # ~3/4 of physical VMEM: ~48 MiB on v7x (64 MiB / TC), ~96 MiB on v5e/v6e (128 MiB),
    # leaving headroom for compiler scratch and the pipeline's I/O double buffers.
    try:
        phys = int(pltpu.get_tpu_info().vmem_capacity_bytes)
    except Exception:
        phys = 64 * 1024 * 1024
    return max(32 * 1024 * 1024, (phys * 3) // 4)


def encoder_block(x, params, num_heads, *, batch_tile=None,
                  compute_dtype=jnp.bfloat16, fast=True,
                  mlp_chunk=512, single_buffer_weights=True):
    B, S, D = x.shape
    mlp_dim = params["w1"].shape[1]
    assert D % num_heads == 0
    hd = D // num_heads

    # Pad S to a multiple of 8 so the (bt,S,D)->(bt*S,D) reshape and row slices stay
    # (8,128)-tile aligned; padded key columns are masked inside the kernel.
    S_pad = ((S + 7) // 8) * 8
    x_in = x if S_pad == S else jnp.pad(x, ((0, 0), (0, S_pad - S), (0, 0)))

    cd = compute_dtype
    cd_bytes = jnp.dtype(cd).itemsize
    mlp_chunk = max(1, min(mlp_chunk, mlp_dim))

    # Fuse Q/K/V into one (D, 3D) weight and fold the 1/sqrt(head_dim) scale into Q host-side.
    scale = 1.0 / math.sqrt(hd)
    wqkv = jnp.concatenate(
        [params["wq"] * scale, params["wk"], params["wv"]], axis=1).astype(cd)
    bqkv = jnp.concatenate(
        [params["bq"] * scale, params["bk"], params["bv"]], axis=1)          # f32
    wo = params["wo"].astype(cd)
    w1 = params["w1"].astype(cd)
    w2 = params["w2"].astype(cd)

    vmem_limit = _default_vmem_limit()

    if batch_tile is None:
        # VMEM-budgeted batch tile: single-buffered weights + per-batch-element activations
        # (qkv/attn scratch, LN/residual temps, one MLP chunk) + pipelined x/out blocks.
        weight_bytes = (wqkv.size + wo.size + w1.size + w2.size) * cd_bytes
        per_b = S_pad * (3 * D + D + 6 * D + mlp_chunk) * 4
        io_per_b = 4 * S_pad * D * x.dtype.itemsize
        budget = vmem_limit - weight_bytes - (8 << 20)
        bt_cap = max(1, budget // (per_b + io_per_b))
        target_steps = min(4, B)                      # keep a real pipeline steady state
        cap = min(bt_cap, max(1, B // target_steps))
        divs = [d for d in range(1, B + 1) if B % d == 0 and d <= cap]
        batch_tile = max(divs) if divs else 1
    assert B % batch_tile == 0, "batch_tile must divide the batch size"
    grid = (B // batch_tile,)

    def build_in_specs(single_buffer):
        def const_spec(shape):
            nd = len(shape)
            idx = lambda b, _n=nd: (0,) * _n
            if single_buffer:
                # Constant index_map -> never re-fetched; single buffer halves weight VMEM.
                return pl.BlockSpec(shape, idx, pipeline_mode=pl.Buffered(1))
            return pl.BlockSpec(shape, idx)
        return [
            pl.BlockSpec((batch_tile, S_pad, D), lambda b: (b, 0, 0)),   # x
            const_spec((1, D)), const_spec((1, D)),                      # ln1 weight / bias
            const_spec((D, 3 * D)), const_spec((1, 3 * D)),              # fused Wqkv / bqkv
            const_spec((D, D)), const_spec((1, D)),                      # Wo / bo
            const_spec((1, D)), const_spec((1, D)),                      # ln2 weight / bias
            const_spec((D, mlp_dim)), const_spec((1, mlp_dim)),          # MLP linear1
            const_spec((mlp_dim, D)), const_spec((1, D)),                # MLP linear2
        ]

    kernel = functools.partial(encoder_block_kernel,
                               num_heads=num_heads, seq_valid=S,
                               mlp_chunk=mlp_chunk, fast=fast)

    def run(single_buffer):
        return pl.pallas_call(
            kernel,
            out_shape=jax.ShapeDtypeStruct((B, S_pad, D), x.dtype),
            grid=grid,
            in_specs=build_in_specs(single_buffer),
            out_specs=pl.BlockSpec((batch_tile, S_pad, D), lambda b: (b, 0, 0)),
            scratch_shapes=[
                pltpu.VMEM((batch_tile * S_pad, 3 * D), jnp.float32),    # staged QKV
                pltpu.VMEM((batch_tile * S_pad, D), jnp.float32),        # lane-packed head outs
            ],
            compiler_params=pltpu.CompilerParams(
                dimension_semantics=("parallel",),
                vmem_limit_bytes=vmem_limit,
            ),
        )(x_in, params["ln1_w"], params["ln1_b"],
          wqkv, bqkv, wo, params["bo"],
          params["ln2_w"], params["ln2_b"],
          w1, params["b1"], w2, params["b2"])

    if single_buffer_weights:
        try:
            out = jax.block_until_ready(run(True))
        except Exception:
            # Fallback for JAX versions that reject single-buffered (Buffered(1)) BlockSpecs.
            out = jax.block_until_ready(run(False))
    else:
        out = jax.block_until_ready(run(False))
    return out if S_pad == S else out[:, :S, :]


# ---------------- pure-JAX reference (mirrors the PyTorch forward in eval mode) ----------------
def encoder_block_ref(x, params, num_heads):
    from jax.scipy.special import erf

    def ln(v, w, b, eps=1e-6):
        mu = v.mean(-1, keepdims=True)
        var = ((v - mu) ** 2).mean(-1, keepdims=True)
        return (v - mu) / jnp.sqrt(var + eps) * w + b

    B, S, D = x.shape
    hd = D // num_heads
    xn = ln(x, params["ln1_w"][0], params["ln1_b"][0])
    q = xn @ params["wq"] + params["bq"][0]
    k = xn @ params["wk"] + params["bk"][0]
    v = xn @ params["wv"] + params["bv"][0]

    def split(t):
        return t.reshape(B, S, num_heads, hd).transpose(0, 2, 1, 3)  # (B, h, S, hd)

    qh, kh, vh = split(q) * (1.0 / math.sqrt(hd)), split(k), split(v)
    s = jnp.einsum("bhqd,bhkd->bhqk", qh, kh)
    p = jax.nn.softmax(s, axis=-1)
    o = jnp.einsum("bhqk,bhkd->bhqd", p, vh)
    o = o.transpose(0, 2, 1, 3).reshape(B, S, D)
    attn = o @ params["wo"] + params["bo"][0]
    x1 = attn + x
    y = ln(x1, params["ln2_w"][0], params["ln2_b"][0])
    h1 = y @ params["w1"] + params["b1"][0]
    h1 = 0.5 * h1 * (1.0 + erf(h1 / math.sqrt(2.0)))
    h2 = h1 @ params["w2"] + params["b2"][0]
    return x1 + h2


def init_params(key, hidden_dim, mlp_dim):
    D, M = hidden_dim, mlp_dim
    ks = jax.random.split(key, 6)

    def xavier(k, fan_in, fan_out):
        a = math.sqrt(6.0 / (fan_in + fan_out))
        return jax.random.uniform(k, (fan_in, fan_out), jnp.float32, -a, a)

    return {
        "ln1_w": jnp.ones((1, D), jnp.float32),
        "ln1_b": jnp.zeros((1, D), jnp.float32),
        "wq": xavier(ks[0], D, D), "wk": xavier(ks[1], D, D), "wv": xavier(ks[2], D, D),
        "bq": jnp.zeros((1, D), jnp.float32),
        "bk": jnp.zeros((1, D), jnp.float32),
        "bv": jnp.zeros((1, D), jnp.float32),
        "wo": xavier(ks[3], D, D),
        "bo": jnp.zeros((1, D), jnp.float32),
        "ln2_w": jnp.ones((1, D), jnp.float32),
        "ln2_b": jnp.zeros((1, D), jnp.float32),
        "w1": xavier(ks[4], D, M),
        "b1": 1e-6 * jax.random.normal(ks[5], (1, M), jnp.float32),
        "w2": xavier(jax.random.fold_in(ks[4], 1), M, D),
        "b2": 1e-6 * jax.random.normal(jax.random.fold_in(ks[5], 1), (1, D), jnp.float32),
    }


if __name__ == "__main__":
    B, S, D, num_heads, mlp_dim = 2, 8, 32, 4, 64
    key = jax.random.PRNGKey(0)
    k_x, k_p = jax.random.split(key)
    x = jax.random.normal(k_x, (B, S, D), jnp.float32)
    params = init_params(k_p, D, mlp_dim)

    ref = encoder_block_ref(x, params, num_heads)

    # Precise path: f32 MXU operands + exact divides -> tight tolerance vs reference.
    out_f32 = jax.block_until_ready(
        encoder_block(x, params, num_heads, compute_dtype=jnp.float32, fast=False))
    np.testing.assert_allclose(np.asarray(out_f32), np.asarray(ref), rtol=1e-4, atol=1e-4)

    # Default fast path: bf16 MXU operands (f32 accumulation) + EUP approx reciprocals.
    out_fast = jax.block_until_ready(encoder_block(x, params, num_heads))
    np.testing.assert_allclose(np.asarray(out_fast), np.asarray(ref), rtol=5e-2, atol=5e-2)

    # Non-8-aligned sequence length: exercises the host-side pad + in-kernel key masking.
    S2 = 7
    x2 = jax.random.normal(jax.random.fold_in(k_x, 1), (B, S2, D), jnp.float32)
    ref2 = encoder_block_ref(x2, params, num_heads)
    out2 = jax.block_until_ready(
        encoder_block(x2, params, num_heads, compute_dtype=jnp.float32, fast=False))
    np.testing.assert_allclose(np.asarray(out2), np.asarray(ref2), rtol=1e-4, atol=1e-4)

    print("KERNEL_OK")
</pallas_src>

<mosaic_0001>
module attributes {stable_mosaic.version = 11 : i64} {
  func.func @encoder_block_kernel(%arg0: i32, %arg1: memref<1x8x32xf32, #tpu.memory_space<vmem>>, %arg2: memref<1x32xf32, #tpu.memory_space<vmem>>, %arg3: memref<1x32xf32, #tpu.memory_space<vmem>>, %arg4: memref<32x96xf32, #tpu.memory_space<vmem>>, %arg5: memref<1x96xf32, #tpu.memory_space<vmem>>, %arg6: memref<32x32xf32, #tpu.memory_space<vmem>>, %arg7: memref<1x32xf32, #tpu.memory_space<vmem>>, %arg8: memref<1x32xf32, #tpu.memory_space<vmem>>, %arg9: memref<1x32xf32, #tpu.memory_space<vmem>>, %arg10: memref<32x64xf32, #tpu.memory_space<vmem>>, %arg11: memref<1x64xf32, #tpu.memory_space<vmem>>, %arg12: memref<64x32xf32, #tpu.memory_space<vmem>>, %arg13: memref<1x32xf32, #tpu.memory_space<vmem>>, %arg14: memref<1x8x32xf32, #tpu.memory_space<vmem>>, %arg15: memref<8x96xf32, #tpu.memory_space<vmem>>, %arg16: memref<8x32xf32, #tpu.memory_space<vmem>>) attributes {dimension_semantics = [#tpu.dimension_semantics<parallel>], iteration_bounds = array<i64: 2>, scalar_prefetch = 0 : i64, scratch_operands = 2 : i64, tpu.core_type = #tpu.core_type<tc>, window_params = [{transform_indices = @transform_0, window_bounds = array<i64: 1, 8, 32>}, {pipeline_mode = #tpu.pipeline_mode<synchronous>, transform_indices = @transform_1, window_bounds = array<i64: 1, 32>}, {pipeline_mode = #tpu.pipeline_mode<synchronous>, transform_indices = @transform_2, window_bounds = array<i64: 1, 32>}, {pipeline_mode = #tpu.pipeline_mode<synchronous>, transform_indices = @transform_3, window_bounds = array<i64: 32, 96>}, {pipeline_mode = #tpu.pipeline_mode<synchronous>, transform_indices = @transform_4, window_bounds = array<i64: 1, 96>}, {pipeline_mode = #tpu.pipeline_mode<synchronous>, transform_indices = @transform_5, window_bounds = array<i64: 32, 32>}, {pipeline_mode = #tpu.pipeline_mode<synchronous>, transform_indices = @transform_6, window_bounds = array<i64: 1, 32>}, {pipeline_mode = #tpu.pipeline_mode<synchronous>, transform_indices = @transform_7, window_bounds = array<i64: 1, 32>}, {pipeline_mode = #tpu.pipeline_mode<synchronous>, transform_indices = @transform_8, window_bounds = array<i64: 1, 32>}, {pipeline_mode = #tpu.pipeline_mode<synchronous>, transform_indices = @transform_9, window_bounds = array<i64: 32, 64>}, {pipeline_mode = #tpu.pipeline_mode<synchronous>, transform_indices = @transform_10, window_bounds = array<i64: 1, 64>}, {pipeline_mode = #tpu.pipeline_mode<synchronous>, transform_indices = @transform_11, window_bounds = array<i64: 64, 32>}, {pipeline_mode = #tpu.pipeline_mode<synchronous>, transform_indices = @transform_12, window_bounds = array<i64: 1, 32>}, {transform_indices = @transform_13, window_bounds = array<i64: 1, 8, 32>}]} {
    %c0 = arith.constant 0 : index
    %c0_0 = arith.constant 0 : index
    %c0_1 = arith.constant 0 : index
    %0 = vector.load %arg1[%c0, %c0_0, %c0_1] : memref<1x8x32xf32, #tpu.memory_space<vmem>>, vector<1x8x32xf32>
    %1 = vector.shape_cast %0 : vector<1x8x32xf32> to vector<8x32xf32>
    %c0_2 = arith.constant 0 : index
    %c0_3 = arith.constant 0 : index
    %2 = vector.load %arg2[%c0_2, %c0_3] : memref<1x32xf32, #tpu.memory_space<vmem>>, vector<1x32xf32>
    %3 = vector.shape_cast %2 : vector<1x32xf32> to vector<32xf32>
    %c0_4 = arith.constant 0 : index
    %c0_5 = arith.constant 0 : index
    %4 = vector.load %arg3[%c0_4, %c0_5] : memref<1x32xf32, #tpu.memory_space<vmem>>, vector<1x32xf32>
    %5 = vector.shape_cast %4 : vector<1x32xf32> to vector<32xf32>
    %cst = arith.constant dense<0.000000e+00> : vector<8xf32>
    %6 = vector.multi_reduction <add>, %1, %cst [1] : vector<8x32xf32> to vector<8xf32>
    %7 = vector.shape_cast %6 : vector<8xf32> to vector<8x1xf32>
    %cst_6 = arith.constant 3.200000e+01 : f32
    %8 = vector.broadcast %cst_6 : f32 to vector<8x1xf32>
    %9 = arith.divf %7, %8 : vector<8x1xf32>
    %10 = vector.broadcast %9 : vector<8x1xf32> to vector<8x32xf32>
    %11 = arith.subf %1, %10 : vector<8x32xf32>
    %12 = arith.mulf %11, %11 : vector<8x32xf32>
    %cst_7 = arith.constant dense<0.000000e+00> : vector<8xf32>
    %13 = vector.multi_reduction <add>, %12, %cst_7 [1] : vector<8x32xf32> to vector<8xf32>
    %14 = vector.shape_cast %13 : vector<8xf32> to vector<8x1xf32>
    %cst_8 = arith.constant 3.200000e+01 : f32
    %15 = vector.broadcast %cst_8 : f32 to vector<8x1xf32>
    %16 = arith.divf %14, %15 : vector<8x1xf32>
    %17 = vector.broadcast %9 : vector<8x1xf32> to vector<8x32xf32>
    %18 = arith.subf %1, %17 : vector<8x32xf32>
    %cst_9 = arith.constant 9.99999997E-7 : f32
    %19 = vector.broadcast %cst_9 : f32 to vector<8x1xf32>
    %20 = arith.addf %16, %19 : vector<8x1xf32>
    %21 = math.rsqrt %20 : vector<8x1xf32>
    %22 = vector.broadcast %21 : vector<8x1xf32> to vector<8x32xf32>
    %23 = arith.mulf %18, %22 : vector<8x32xf32>
    %24 = vector.shape_cast %3 : vector<32xf32> to vector<1x32xf32>
    %25 = vector.broadcast %24 : vector<1x32xf32> to vector<8x32xf32>
    %26 = arith.mulf %23, %25 : vector<8x32xf32>
    %27 = vector.shape_cast %5 : vector<32xf32> to vector<1x32xf32>
    %28 = vector.broadcast %27 : vector<1x32xf32> to vector<8x32xf32>
    %29 = arith.addf %26, %28 : vector<8x32xf32>
    %c0_10 = arith.constant 0 : index
    %c0_11 = arith.constant 0 : index
    %30 = vector.load %arg4[%c0_10, %c0_11] : memref<32x96xf32, #tpu.memory_space<vmem>>, vector<32x96xf32>
    %cst_12 = arith.constant dense<0.000000e+00> : vector<8x96xf32>
    %31 = tpu.matmul %29, %30, %cst_12 {dimension_numbers = #tpu.dot_dimension_numbers<[1], [0], [0], [1], [0, 0, 1, 1], [], []>} : vector<8x32xf32>, vector<32x96xf32>, vector<8x96xf32> -> vector<8x96xf32>
    %c0_13 = arith.constant 0 : index
    %c0_14 = arith.constant 0 : index
    %32 = vector.load %arg5[%c0_13, %c0_14] : memref<1x96xf32, #tpu.memory_space<vmem>>, vector<1x96xf32>
    %33 = vector.shape_cast %32 : vector<1x96xf32> to vector<96xf32>
    %34 = vector.shape_cast %33 : vector<96xf32> to vector<1x96xf32>
    %35 = vector.broadcast %34 : vector<1x96xf32> to vector<8x96xf32>
    %36 = arith.addf %31, %35 : vector<8x96xf32>
    %c0_15 = arith.constant 0 : index
    %c0_16 = arith.constant 0 : index
    %37 = vector.load %arg15[%c0_15, %c0_16] : memref<8x96xf32, #tpu.memory_space<vmem>>, vector<8x96xf32>
    tpu.vector_store %arg15[%c0_15, %c0_16], %36 {strides = array<i32>} : memref<8x96xf32, #tpu.memory_space<vmem>>, vector<8x96xf32>,
    %c0_17 = arith.constant 0 : index
    %c0_18 = arith.constant 0 : index
    %38 = vector.load %arg15[%c0_17, %c0_18] : memref<8x96xf32, #tpu.memory_space<vmem>>, vector<8x8xf32>
    %c0_19 = arith.constant 0 : index
    %c32 = arith.constant 32 : index
    %39 = vector.load %arg15[%c0_19, %c32] : memref<8x96xf32, #tpu.memory_space<vmem>>, vector<8x8xf32>
    %c0_20 = arith.constant 0 : index
    %c64 = arith.constant 64 : index
    %40 = vector.load %arg15[%c0_20, %c64] : memref<8x96xf32, #tpu.memory_space<vmem>>, vector<8x8xf32>
    %41 = tpu.transpose %39, [1, 0] : vector<8x8xf32> -> vector<8x8xf32>
    %cst_21 = arith.constant dense<0.000000e+00> : vector<8x8xf32>
    %42 = tpu.matmul %38, %41, %cst_21 {dimension_numbers = #tpu.dot_dimension_numbers<[1], [0], [0], [1], [0, 0, 1, 1], [], []>} : vector<8x8xf32>, vector<8x8xf32>, vector<8x8xf32> -> vector<8x8xf32>
    %cst_22 = arith.constant dense<0xFF800000> : vector<8xf32>
    %43 = vector.multi_reduction <maximumf>, %42, %cst_22 [1] : vector<8x8xf32> to vector<8xf32>
    %44 = vector.shape_cast %43 : vector<8xf32> to vector<8x1xf32>
    %45 = vector.broadcast %44 : vector<8x1xf32> to vector<8x8xf32>
    %46 = arith.subf %42, %45 : vector<8x8xf32>
    %47 = math.exp %46 : vector<8x8xf32>
    %cst_23 = arith.constant dense<0.000000e+00> : vector<8xf32>
    %48 = vector.multi_reduction <add>, %47, %cst_23 [1] : vector<8x8xf32> to vector<8xf32>
    %49 = vector.shape_cast %48 : vector<8xf32> to vector<8x1xf32>
    %50 = vector.broadcast %49 : vector<8x1xf32> to vector<8x8xf32>
    %51 = arith.divf %47, %50 : vector<8x8xf32>
    %cst_24 = arith.constant dense<0.000000e+00> : vector<8x8xf32>
    %52 = tpu.matmul %51, %40, %cst_24 {dimension_numbers = #tpu.dot_dimension_numbers<[1], [0], [0], [1], [0, 0, 1, 1], [], []>} : vector<8x8xf32>, vector<8x8xf32>, vector<8x8xf32> -> vector<8x8xf32>
    %c0_25 = arith.constant 0 : index
    %c0_26 = arith.constant 0 : index
    %53 = vector.load %arg16[%c0_25, %c0_26] : memref<8x32xf32, #tpu.memory_space<vmem>>, vector<8x8xf32>
    tpu.vector_store %arg16[%c0_25, %c0_26], %52 {strides = array<i32>} : memref<8x32xf32, #tpu.memory_space<vmem>>, vector<8x8xf32>,
    %c0_27 = arith.constant 0 : index
    %c8 = arith.constant 8 : index
    %54 = vector.load %arg15[%c0_27, %c8] : memref<8x96xf32, #tpu.memory_space<vmem>>, vector<8x8xf32>
    %c0_28 = arith.constant 0 : index
    %c40 = arith.constant 40 : index
    %55 = vector.load %arg15[%c0_28, %c40] : memref<8x96xf32, #tpu.memory_space<vmem>>, vector<8x8xf32>
    %c0_29 = arith.constant 0 : index
    %c72 = arith.constant 72 : index
    %56 = vector.load %arg15[%c0_29, %c72] : memref<8x96xf32, #tpu.memory_space<vmem>>, vector<8x8xf32>
    %57 = tpu.transpose %55, [1, 0] : vector<8x8xf32> -> vector<8x8xf32>
    %cst_30 = arith.constant dense<0.000000e+00> : vector<8x8xf32>
    %58 = tpu.matmul %54, %57, %cst_30 {dimension_numbers = #tpu.dot_dimension_numbers<[1], [0], [0], [1], [0, 0, 1, 1], [], []>} : vector<8x8xf32>, vector<8x8xf32>, vector<8x8xf32> -> vector<8x8xf32>
    %cst_31 = arith.constant dense<0xFF800000> : vector<8xf32>
    %59 = vector.multi_reduction <maximumf>, %58, %cst_31 [1] : vector<8x8xf32> to vector<8xf32>
    %60 = vector.shape_cast %59 : vector<8xf32> to vector<8x1xf32>
    %61 = vector.broadcast %60 : vector<8x1xf32> to vector<8x8xf32>
    %62 = arith.subf %58, %61 : vector<8x8xf32>
    %63 = math.exp %62 : vector<8x8xf32>
    %cst_32 = arith.constant dense<0.000000e+00> : vector<8xf32>
    %64 = vector.multi_reduction <add>, %63, %cst_32 [1] : vector<8x8xf32> to vector<8xf32>
    %65 = vector.shape_cast %64 : vector<8xf32> to vector<8x1xf32>
    %66 = vector.broadcast %65 : vector<8x1xf32> to vector<8x8xf32>
    %67 = arith.divf %63, %66 : vector<8x8xf32>
    %cst_33 = arith.constant dense<0.000000e+00> : vector<8x8xf32>
    %68 = tpu.matmul %67, %56, %cst_33 {dimension_numbers = #tpu.dot_dimension_numbers<[1], [0], [0], [1], [0, 0, 1, 1], [], []>} : vector<8x8xf32>, vector<8x8xf32>, vector<8x8xf32> -> vector<8x8xf32>
    %c0_34 = arith.constant 0 : index
    %c8_35 = arith.constant 8 : index
    %69 = vector.load %arg16[%c0_34, %c8_35] : memref<8x32xf32, #tpu.memory_space<vmem>>, vector<8x8xf32>
    tpu.vector_store %arg16[%c0_34, %c8_35], %68 {strides = array<i32>} : memref<8x32xf32, #tpu.memory_space<vmem>>, vector<8x8xf32>,
    %c0_36 = arith.constant 0 : index
    %c16 = arith.constant 16 : index
    %70 = vector.load %arg15[%c0_36, %c16] : memref<8x96xf32, #tpu.memory_space<vmem>>, vector<8x8xf32>
    %c0_37 = arith.constant 0 : index
    %c48 = arith.constant 48 : index
    %71 = vector.load %arg15[%c0_37, %c48] : memref<8x96xf32, #tpu.memory_space<vmem>>, vector<8x8xf32>
    %c0_38 = arith.constant 0 : index
    %c80 = arith.constant 80 : index
    %72 = vector.load %arg15[%c0_38, %c80] : memref<8x96xf32, #tpu.memory_space<vmem>>, vector<8x8xf32>
    %73 = tpu.transpose %71, [1, 0] : vector<8x8xf32> -> vector<8x8xf32>
    %cst_39 = arith.constant dense<0.000000e+00> : vector<8x8xf32>
    %74 = tpu.matmul %70, %73, %cst_39 {dimension_numbers = #tpu.dot_dimension_numbers<[1], [0], [0], [1], [0, 0, 1, 1], [], []>} : vector<8x8xf32>, vector<8x8xf32>, vector<8x8xf32> -> vector<8x8xf32>
    %cst_40 = arith.constant dense<0xFF800000> : vector<8xf32>
    %75 = vector.multi_reduction <maximumf>, %74, %cst_40 [1] : vector<8x8xf32> to vector<8xf32>
    %76 = vector.shape_cast %75 : vector<8xf32> to vector<8x1xf32>
    %77 = vector.broadcast %76 : vector<8x1xf32> to vector<8x8xf32>
    %78 = arith.subf %74, %77 : vector<8x8xf32>
    %79 = math.exp %78 : vector<8x8xf32>
    %cst_41 = arith.constant dense<0.000000e+00> : vector<8xf32>
    %80 = vector.multi_reduction <add>, %79, %cst_41 [1] : vector<8x8xf32> to vector<8xf32>
    %81 = vector.shape_cast %80 : vector<8xf32> to vector<8x1xf32>
    %82 = vector.broadcast %81 : vector<8x1xf32> to vector<8x8xf32>
    %83 = arith.divf %79, %82 : vector<8x8xf32>
    %cst_42 = arith.constant dense<0.000000e+00> : vector<8x8xf32>
    %84 = tpu.matmul %83, %72, %cst_42 {dimension_numbers = #tpu.dot_dimension_numbers<[1], [0], [0], [1], [0, 0, 1, 1], [], []>} : vector<8x8xf32>, vector<8x8xf32>, vector<8x8xf32> -> vector<8x8xf32>
    %c0_43 = arith.constant 0 : index
    %c16_44 = arith.constant 16 : index
    %85 = vector.load %arg16[%c0_43, %c16_44] : memref<8x32xf32, #tpu.memory_space<vmem>>, vector<8x8xf32>
    tpu.vector_store %arg16[%c0_43, %c16_44], %84 {strides = array<i32>} : memref<8x32xf32, #tpu.memory_space<vmem>>, vector<8x8xf32>,
    %c0_45 = arith.constant 0 : index
    %c24 = arith.constant 24 : index
    %86 = vector.load %arg15[%c0_45, %c24] : memref<8x96xf32, #tpu.memory_space<vmem>>, vector<8x8xf32>
    %c0_46 = arith.constant 0 : index
    %c56 = arith.constant 56 : index
    %87 = vector.load %arg15[%c0_46, %c56] : memref<8x96xf32, #tpu.memory_space<vmem>>, vector<8x8xf32>
    %c0_47 = arith.constant 0 : index
    %c88 = arith.constant 88 : index
    %88 = vector.load %arg15[%c0_47, %c88] : memref<8x96xf32, #tpu.memory_space<vmem>>, vector<8x8xf32>
    %89 = tpu.transpose %87, [1, 0] : vector<8x8xf32> -> vector<8x8xf32>
    %cst_48 = arith.constant dense<0.000000e+00> : vector<8x8xf32>
    %90 = tpu.matmul %86, %89, %cst_48 {dimension_numbers = #tpu.dot_dimension_numbers<[1], [0], [0], [1], [0, 0, 1, 1], [], []>} : vector<8x8xf32>, vector<8x8xf32>, vector<8x8xf32> -> vector<8x8xf32>
    %cst_49 = arith.constant dense<0xFF800000> : vector<8xf32>
    %91 = vector.multi_reduction <maximumf>, %90, %cst_49 [1] : vector<8x8xf32> to vector<8xf32>
    %92 = vector.shape_cast %91 : vector<8xf32> to vector<8x1xf32>
    %93 = vector.broadcast %92 : vector<8x1xf32> to vector<8x8xf32>
    %94 = arith.subf %90, %93 : vector<8x8xf32>
    %95 = math.exp %94 : vector<8x8xf32>
    %cst_50 = arith.constant dense<0.000000e+00> : vector<8xf32>
    %96 = vector.multi_reduction <add>, %95, %cst_50 [1] : vector<8x8xf32> to vector<8xf32>
    %97 = vector.shape_cast %96 : vector<8xf32> to vector<8x1xf32>
    %98 = vector.broadcast %97 : vector<8x1xf32> to vector<8x8xf32>
    %99 = arith.divf %95, %98 : vector<8x8xf32>
    %cst_51 = arith.constant dense<0.000000e+00> : vector<8x8xf32>
    %100 = tpu.matmul %99, %88, %cst_51 {dimension_numbers = #tpu.dot_dimension_numbers<[1], [0], [0], [1], [0, 0, 1, 1], [], []>} : vector<8x8xf32>, vector<8x8xf32>, vector<8x8xf32> -> vector<8x8xf32>
    %c0_52 = arith.constant 0 : index
    %c24_53 = arith.constant 24 : index
    %101 = vector.load %arg16[%c0_52, %c24_53] : memref<8x32xf32, #tpu.memory_space<vmem>>, vector<8x8xf32>
    tpu.vector_store %arg16[%c0_52, %c24_53], %100 {strides = array<i32>} : memref<8x32xf32, #tpu.memory_space<vmem>>, vector<8x8xf32>,
    %c0_54 = arith.constant 0 : index
    %c0_55 = arith.constant 0 : index
    %102 = vector.load %arg16[%c0_54, %c0_55] : memref<8x32xf32, #tpu.memory_space<vmem>>, vector<8x32xf32>
    %c0_56 = arith.constant 0 : index
    %c0_57 = arith.constant 0 : index
    %103 = vector.load %arg6[%c0_56, %c0_57] : memref<32x32xf32, #tpu.memory_space<vmem>>, vector<32x32xf32>
    %cst_58 = arith.constant dense<0.000000e+00> : vector<8x32xf32>
    %104 = tpu.matmul %102, %103, %cst_58 {dimension_numbers = #tpu.dot_dimension_numbers<[1], [0], [0], [1], [0, 0, 1, 1], [], []>} : vector<8x32xf32>, vector<32x32xf32>, vector<8x32xf32> -> vector<8x32xf32>
    %c0_59 = arith.constant 0 : index
    %c0_60 = arith.constant 0 : index
    %105 = vector.load %arg7[%c0_59, %c0_60] : memref<1x32xf32, #tpu.memory_space<vmem>>, vector<1x32xf32>
    %106 = vector.shape_cast %105 : vector<1x32xf32> to vector<32xf32>
    %107 = vector.shape_cast %106 : vector<32xf32> to vector<1x32xf32>
    %108 = vector.broadcast %107 : vector<1x32xf32> to vector<8x32xf32>
    %109 = arith.addf %104, %108 : vector<8x32xf32>
    %110 = arith.addf %109, %1 : vector<8x32xf32>
    %c0_61 = arith.constant 0 : index
    %c0_62 = arith.constant 0 : index
    %111 = vector.load %arg8[%c0_61, %c0_62] : memref<1x32xf32, #tpu.memory_space<vmem>>, vector<1x32xf32>
    %112 = vector.shape_cast %111 : vector<1x32xf32> to vector<32xf32>
    %c0_63 = arith.constant 0 : index
    %c0_64 = arith.constant 0 : index
    %113 = vector.load %arg9[%c0_63, %c0_64] : memref<1x32xf32, #tpu.memory_space<vmem>>, vector<1x32xf32>
    %114 = vector.shape_cast %113 : vector<1x32xf32> to vector<32xf32>
    %cst_65 = arith.constant dense<0.000000e+00> : vector<8xf32>
    %115 = vector.multi_reduction <add>, %110, %cst_65 [1] : vector<8x32xf32> to vector<8xf32>
    %116 = vector.shape_cast %115 : vector<8xf32> to vector<8x1xf32>
    %cst_66 = arith.constant 3.200000e+01 : f32
    %117 = vector.broadcast %cst_66 : f32 to vector<8x1xf32>
    %118 = arith.divf %116, %117 : vector<8x1xf32>
    %119 = vector.broadcast %118 : vector<8x1xf32> to vector<8x32xf32>
    %120 = arith.subf %110, %119 : vector<8x32xf32>
    %121 = arith.mulf %120, %120 : vector<8x32xf32>
    %cst_67 = arith.constant dense<0.000000e+00> : vector<8xf32>
    %122 = vector.multi_reduction <add>, %121, %cst_67 [1] : vector<8x32xf32> to vector<8xf32>
    %123 = vector.shape_cast %122 : vector<8xf32> to vector<8x1xf32>
    %cst_68 = arith.constant 3.200000e+01 : f32
    %124 = vector.broadcast %cst_68 : f32 to vector<8x1xf32>
    %125 = arith.divf %123, %124 : vector<8x1xf32>
    %126 = vector.broadcast %118 : vector<8x1xf32> to vector<8x32xf32>
    %127 = arith.subf %110, %126 : vector<8x32xf32>
    %cst_69 = arith.constant 9.99999997E-7 : f32
    %128 = vector.broadcast %cst_69 : f32 to vector<8x1xf32>
    %129 = arith.addf %125, %128 : vector<8x1xf32>
    %130 = math.rsqrt %129 : vector<8x1xf32>
    %131 = vector.broadcast %130 : vector<8x1xf32> to vector<8x32xf32>
    %132 = arith.mulf %127, %131 : vector<8x32xf32>
    %133 = vector.shape_cast %112 : vector<32xf32> to vector<1x32xf32>
    %134 = vector.broadcast %133 : vector<1x32xf32> to vector<8x32xf32>
    %135 = arith.mulf %132, %134 : vector<8x32xf32>
    %136 = vector.shape_cast %114 : vector<32xf32> to vector<1x32xf32>
    %137 = vector.broadcast %136 : vector<1x32xf32> to vector<8x32xf32>
    %138 = arith.addf %135, %137 : vector<8x32xf32>
    %c0_70 = arith.constant 0 : index
    %c0_71 = arith.constant 0 : index
    %139 = vector.load %arg11[%c0_70, %c0_71] : memref<1x64xf32, #tpu.memory_space<vmem>>, vector<1x64xf32>
    %140 = vector.shape_cast %139 : vector<1x64xf32> to vector<64xf32>
    %cst_72 = arith.constant 0.000000e+00 : f32
    %141 = vector.broadcast %cst_72 : f32 to vector<8x32xf32>
    %c0_73 = arith.constant 0 : index
    %c0_74 = arith.constant 0 : index
    %142 = vector.load %arg10[%c0_73, %c0_74] : memref<32x64xf32, #tpu.memory_space<vmem>>, vector<32x64xf32>
    %cst_75 = arith.constant dense<0.000000e+00> : vector<8x64xf32>
    %143 = tpu.matmul %138, %142, %cst_75 {dimension_numbers = #tpu.dot_dimension_numbers<[1], [0], [0], [1], [0, 0, 1, 1], [], []>} : vector<8x32xf32>, vector<32x64xf32>, vector<8x64xf32> -> vector<8x64xf32>
    %144 = vector.shape_cast %140 : vector<64xf32> to vector<1x64xf32>
    %145 = vector.broadcast %144 : vector<1x64xf32> to vector<8x64xf32>
    %146 = arith.addf %143, %145 : vector<8x64xf32>
    %cst_76 = arith.constant 5.000000e-01 : f32
    %147 = vector.broadcast %cst_76 : f32 to vector<8x64xf32>
    %148 = arith.mulf %147, %146 : vector<8x64xf32>
    %cst_77 = arith.constant 0.707106769 : f32
    %149 = vector.broadcast %cst_77 : f32 to vector<8x64xf32>
    %150 = arith.mulf %146, %149 : vector<8x64xf32>
    %cst_78 = arith.constant 0.000000e+00 : f32
    %151 = vector.broadcast %cst_78 : f32 to vector<8x64xf32>
    %152 = arith.cmpf oge, %150, %151 : vector<8x64xf32>
    %cst_79 = arith.constant 1.000000e+00 : f32
    %cst_80 = arith.constant -1.000000e+00 : f32
    %153 = vector.broadcast %cst_79 : f32 to vector<8x64xf32>
    %154 = vector.broadcast %cst_80 : f32 to vector<8x64xf32>
    %155 = arith.select %152, %153, %154 : vector<8x64xi1>, vector<8x64xf32>
    %156 = math.absf %150 : vector<8x64xf32>
    %cst_81 = arith.constant 0.327591091 : f32
    %157 = vector.broadcast %cst_81 : f32 to vector<8x64xf32>
    %158 = arith.mulf %157, %156 : vector<8x64xf32>
    %cst_82 = arith.constant 1.000000e+00 : f32
    %159 = vector.broadcast %cst_82 : f32 to vector<8x64xf32>
    %160 = arith.addf %159, %158 : vector<8x64xf32>
    %cst_83 = arith.constant 1.000000e+00 : f32
    %161 = vector.broadcast %cst_83 : f32 to vector<8x64xf32>
    %162 = arith.divf %161, %160 : vector<8x64xf32>
    %cst_84 = arith.constant 1.06140542 : f32
    %163 = vector.broadcast %cst_84 : f32 to vector<8x64xf32>
    %164 = arith.mulf %163, %162 : vector<8x64xf32>
    %cst_85 = arith.constant -1.45315206 : f32
    %165 = vector.broadcast %cst_85 : f32 to vector<8x64xf32>
    %166 = arith.addf %164, %165 : vector<8x64xf32>
    %167 = arith.mulf %166, %162 : vector<8x64xf32>
    %cst_86 = arith.constant 1.42141378 : f32
    %168 = vector.broadcast %cst_86 : f32 to vector<8x64xf32>
    %169 = arith.addf %167, %168 : vector<8x64xf32>
    %170 = arith.mulf %169, %162 : vector<8x64xf32>
    %cst_87 = arith.constant -0.284496725 : f32
    %171 = vector.broadcast %cst_87 : f32 to vector<8x64xf32>
    %172 = arith.addf %170, %171 : vector<8x64xf32>
    %173 = arith.mulf %172, %162 : vector<8x64xf32>
    %cst_88 = arith.constant 0.254829586 : f32
    %174 = vector.broadcast %cst_88 : f32 to vector<8x64xf32>
    %175 = arith.addf %173, %174 : vector<8x64xf32>
    %176 = arith.mulf %175, %162 : vector<8x64xf32>
    %cst_89 = arith.constant 0.000000e+00 : f32
    %177 = vector.broadcast %cst_89 : f32 to vector<8x64xf32>
    %178 = arith.subf %177, %156 : vector<8x64xf32>
    %179 = arith.mulf %178, %156 : vector<8x64xf32>
    %180 = math.exp %179 : vector<8x64xf32>
    %181 = arith.mulf %176, %180 : vector<8x64xf32>
    %cst_90 = arith.constant 1.000000e+00 : f32
    %182 = vector.broadcast %cst_90 : f32 to vector<8x64xf32>
    %183 = arith.subf %182, %181 : vector<8x64xf32>
    %184 = arith.mulf %155, %183 : vector<8x64xf32>
    %cst_91 = arith.constant 1.000000e+00 : f32
    %185 = vector.broadcast %cst_91 : f32 to vector<8x64xf32>
    %186 = arith.addf %185, %184 : vector<8x64xf32>
    %187 = arith.mulf %148, %186 : vector<8x64xf32>
    %c0_92 = arith.constant 0 : index
    %c0_93 = arith.constant 0 : index
    %188 = vector.load %arg12[%c0_92, %c0_93] : memref<64x32xf32, #tpu.memory_space<vmem>>, vector<64x32xf32>
    %cst_94 = arith.constant dense<0.000000e+00> : vector<8x32xf32>
    %189 = tpu.matmul %187, %188, %cst_94 {dimension_numbers = #tpu.dot_dimension_numbers<[1], [0], [0], [1], [0, 0, 1, 1], [], []>} : vector<8x64xf32>, vector<64x32xf32>, vector<8x32xf32> -> vector<8x32xf32>
    %190 = arith.addf %141, %189 : vector<8x32xf32>
    %c0_95 = arith.constant 0 : index
    %c0_96 = arith.constant 0 : index
    %191 = vector.load %arg13[%c0_95, %c0_96] : memref<1x32xf32, #tpu.memory_space<vmem>>, vector<1x32xf32>
    %192 = vector.shape_cast %191 : vector<1x32xf32> to vector<32xf32>
    %193 = vector.shape_cast %192 : vector<32xf32> to vector<1x32xf32>
    %194 = vector.broadcast %193 : vector<1x32xf32> to vector<8x32xf32>
    %195 = arith.addf %190, %194 : vector<8x32xf32>
    %196 = arith.addf %110, %195 : vector<8x32xf32>
    %197 = vector.shape_cast %196 : vector<8x32xf32> to vector<1x8x32xf32>
    %c0_97 = arith.constant 0 : index
    %c0_98 = arith.constant 0 : index
    %c0_99 = arith.constant 0 : index
    %198 = vector.load %arg14[%c0_97, %c0_98, %c0_99] : memref<1x8x32xf32, #tpu.memory_space<vmem>>, vector<1x8x32xf32>
    tpu.vector_store %arg14[%c0_97, %c0_98, %c0_99], %197 {strides = array<i32>} : memref<1x8x32xf32, #tpu.memory_space<vmem>>, vector<1x8x32xf32>,
    return
  }
  func.func @transform_0(%arg0: i32) -> (i32, i32, i32) {
    %c0_i32 = arith.constant 0 : i32
    %c0_i32_0 = arith.constant 0 : i32
    %c0_i32_1 = arith.constant 0 : i32
    return %arg0, %c0_i32, %c0_i32_0 : i32, i32, i32
  }
  func.func @transform_1(%arg0: i32) -> (i32, i32) {
    %c0_i32 = arith.constant 0 : i32
    %c0_i32_0 = arith.constant 0 : i32
    %c0_i32_1 = arith.constant 0 : i32
    return %c0_i32, %c0_i32_0 : i32, i32
  }
  func.func @transform_2(%arg0: i32) -> (i32, i32) {
    %c0_i32 = arith.constant 0 : i32
    %c0_i32_0 = arith.constant 0 : i32
    %c0_i32_1 = arith.constant 0 : i32
    return %c0_i32, %c0_i32_0 : i32, i32
  }
  func.func @transform_3(%arg0: i32) -> (i32, i32) {
    %c0_i32 = arith.constant 0 : i32
    %c0_i32_0 = arith.constant 0 : i32
    %c0_i32_1 = arith.constant 0 : i32
    return %c0_i32, %c0_i32_0 : i32, i32
  }
  func.func @transform_4(%arg0: i32) -> (i32, i32) {
    %c0_i32 = arith.constant 0 : i32
    %c0_i32_0 = arith.constant 0 : i32
    %c0_i32_1 = arith.constant 0 : i32
    return %c0_i32, %c0_i32_0 : i32, i32
  }
  func.func @transform_5(%arg0: i32) -> (i32, i32) {
    %c0_i32 = arith.constant 0 : i32
    %c0_i32_0 = arith.constant 0 : i32
    %c0_i32_1 = arith.constant 0 : i32
    return %c0_i32, %c0_i32_0 : i32, i32
  }
  func.func @transform_6(%arg0: i32) -> (i32, i32) {
    %c0_i32 = arith.constant 0 : i32
    %c0_i32_0 = arith.constant 0 : i32
    %c0_i32_1 = arith.constant 0 : i32
    return %c0_i32, %c0_i32_0 : i32, i32
  }
  func.func @transform_7(%arg0: i32) -> (i32, i32) {
    %c0_i32 = arith.constant 0 : i32
    %c0_i32_0 = arith.constant 0 : i32
    %c0_i32_1 = arith.constant 0 : i32
    return %c0_i32, %c0_i32_0 : i32, i32
  }
  func.func @transform_8(%arg0: i32) -> (i32, i32) {
    %c0_i32 = arith.constant 0 : i32
    %c0_i32_0 = arith.constant 0 : i32
    %c0_i32_1 = arith.constant 0 : i32
    return %c0_i32, %c0_i32_0 : i32, i32
  }
  func.func @transform_9(%arg0: i32) -> (i32, i32) {
    %c0_i32 = arith.constant 0 : i32
    %c0_i32_0 = arith.constant 0 : i32
    %c0_i32_1 = arith.constant 0 : i32
    return %c0_i32, %c0_i32_0 : i32, i32
  }
  func.func @transform_10(%arg0: i32) -> (i32, i32) {
    %c0_i32 = arith.constant 0 : i32
    %c0_i32_0 = arith.constant 0 : i32
    %c0_i32_1 = arith.constant 0 : i32
    return %c0_i32, %c0_i32_0 : i32, i32
  }
  func.func @transform_11(%arg0: i32) -> (i32, i32) {
    %c0_i32 = arith.constant 0 : i32
    %c0_i32_0 = arith.constant 0 : i32
    %c0_i32_1 = arith.constant 0 : i32
    return %c0_i32, %c0_i32_0 : i32, i32
  }
  func.func @transform_12(%arg0: i32) -> (i32, i32) {
    %c0_i32 = arith.constant 0 : i32
    %c0_i32_0 = arith.constant 0 : i32
    %c0_i32_1 = arith.constant 0 : i32
    return %c0_i32, %c0_i32_0 : i32, i32
  }
  func.func @transform_13(%arg0: i32) -> (i32, i32, i32) {
    %c0_i32 = arith.constant 0 : i32
    %c0_i32_0 = arith.constant 0 : i32
    %c0_i32_1 = arith.constant 0 : i32
    return %arg0, %c0_i32, %c0_i32_0 : i32, i32, i32
  }
}

module attributes {stable_mosaic.version = 11 : i64} {
  func.func @encoder_block_kernel(%arg0: i32, %arg1: memref<1x8x32xf32, #tpu.memory_space<vmem>>, %arg2: memref<1x32xf32, #tpu.memory_space<vmem>>, %arg3: memref<1x32xf32, #tpu.memory_space<vmem>>, %arg4: memref<32x96xf32, #tpu.memory_space<vmem>>, %arg5: memref<1x96xf32, #tpu.memory_space<vmem>>, %arg6: memref<32x32xf32, #tpu.memory_space<vmem>>, %arg7: memref<1x32xf32, #tpu.memory_space<vmem>>, %arg8: memref<1x32xf32, #tpu.memory_space<vmem>>, %arg9: memref<1x32xf32, #tpu.memory_space<vmem>>, %arg10: memref<32x64xf32, #tpu.memory_space<vmem>>, %arg11: memref<1x64xf32, #tpu.memory_space<vmem>>, %arg12: memref<64x32xf32, #tpu.memory_space<vmem>>, %arg13: memref<1x32xf32, #tpu.memory_space<vmem>>, %arg14: memref<1x8x32xf32, #tpu.memory_space<vmem>>, %arg15: memref<8x96xf32, #tpu.memory_space<vmem>>, %arg16: memref<8x32xf32, #tpu.memory_space<vmem>>) attributes {dimension_semantics = [#tpu.dimension_semantics<parallel>], iteration_bounds = array<i64: 2>, scalar_prefetch = 0 : i64, scratch_operands = 2 : i64, tpu.core_type = #tpu.core_type<tc>, window_params = [{transform_indices = @transform_0, window_bounds = array<i64: 1, 8, 32>}, {pipeline_mode = #tpu.pipeline_mode<synchronous>, transform_indices = @transform_1, window_bounds = array<i64: 1, 32>}, {pipeline_mode = #tpu.pipeline_mode<synchronous>, transform_indices = @transform_2, window_bounds = array<i64: 1, 32>}, {pipeline_mode = #tpu.pipeline_mode<synchronous>, transform_indices = @transform_3, window_bounds = array<i64: 32, 96>}, {pipeline_mode = #tpu.pipeline_mode<synchronous>, transform_indices = @transform_4, window_bounds = array<i64: 1, 96>}, {pipeline_mode = #tpu.pipeline_mode<synchronous>, transform_indices = @transform_5, window_bounds = array<i64: 32, 32>}, {pipeline_mode = #tpu.pipeline_mode<synchronous>, transform_indices = @transform_6, window_bounds = array<i64: 1, 32>}, {pipeline_mode = #tpu.pipeline_mode<synchronous>, transform_indices = @transform_7, window_bounds = array<i64: 1, 32>}, {pipeline_mode = #tpu.pipeline_mode<synchronous>, transform_indices = @transform_8, window_bounds = array<i64: 1, 32>}, {pipeline_mode = #tpu.pipeline_mode<synchronous>, transform_indices = @transform_9, window_bounds = array<i64: 32, 64>}, {pipeline_mode = #tpu.pipeline_mode<synchronous>, transform_indices = @transform_10, window_bounds = array<i64: 1, 64>}, {pipeline_mode = #tpu.pipeline_mode<synchronous>, transform_indices = @transform_11, window_bounds = array<i64: 64, 32>}, {pipeline_mode = #tpu.pipeline_mode<synchronous>, transform_indices = @transform_12, window_bounds = array<i64: 1, 32>}, {transform_indices = @transform_13, window_bounds = array<i64: 1, 8, 32>}]} {
    %c0 = arith.constant 0 : index
    %c0_0 = arith.constant 0 : index
    %c0_1 = arith.constant 0 : index
    %0 = vector.load %arg1[%c0, %c0_0, %c0_1] : memref<1x8x32xf32, #tpu.memory_space<vmem>>, vector<1x8x32xf32>
    %1 = vector.shape_cast %0 : vector<1x8x32xf32> to vector<8x32xf32>
    %c0_2 = arith.constant 0 : index
    %c0_3 = arith.constant 0 : index
    %2 = vector.load %arg2[%c0_2, %c0_3] : memref<1x32xf32, #tpu.memory_space<vmem>>, vector<1x32xf32>
    %3 = vector.shape_cast %2 : vector<1x32xf32> to vector<32xf32>
    %c0_4 = arith.constant 0 : index
    %c0_5 = arith.constant 0 : index
    %4 = vector.load %arg3[%c0_4, %c0_5] : memref<1x32xf32, #tpu.memory_space<vmem>>, vector<1x32xf32>
    %5 = vector.shape_cast %4 : vector<1x32xf32> to vector<32xf32>
    %cst = arith.constant dense<0.000000e+00> : vector<8xf32>
    %6 = vector.multi_reduction <add>, %1, %cst [1] : vector<8x32xf32> to vector<8xf32>
    %7 = vector.shape_cast %6 : vector<8xf32> to vector<8x1xf32>
    %cst_6 = arith.constant 3.200000e+01 : f32
    %8 = vector.broadcast %cst_6 : f32 to vector<8x1xf32>
    %9 = arith.divf %7, %8 : vector<8x1xf32>
    %10 = vector.broadcast %9 : vector<8x1xf32> to vector<8x32xf32>
    %11 = arith.subf %1, %10 : vector<8x32xf32>
    %12 = arith.mulf %11, %11 : vector<8x32xf32>
    %cst_7 = arith.constant dense<0.000000e+00> : vector<8xf32>
    %13 = vector.multi_reduction <add>, %12, %cst_7 [1] : vector<8x32xf32> to vector<8xf32>
    %14 = vector.shape_cast %13 : vector<8xf32> to vector<8x1xf32>
    %cst_8 = arith.constant 3.200000e+01 : f32
    %15 = vector.broadcast %cst_8 : f32 to vector<8x1xf32>
    %16 = arith.divf %14, %15 : vector<8x1xf32>
    %17 = vector.broadcast %9 : vector<8x1xf32> to vector<8x32xf32>
    %18 = arith.subf %1, %17 : vector<8x32xf32>
    %cst_9 = arith.constant 9.99999997E-7 : f32
    %19 = vector.broadcast %cst_9 : f32 to vector<8x1xf32>
    %20 = arith.addf %16, %19 : vector<8x1xf32>
    %21 = math.rsqrt %20 : vector<8x1xf32>
    %22 = vector.broadcast %21 : vector<8x1xf32> to vector<8x32xf32>
    %23 = arith.mulf %18, %22 : vector<8x32xf32>
    %24 = vector.shape_cast %3 : vector<32xf32> to vector<1x32xf32>
    %25 = vector.broadcast %24 : vector<1x32xf32> to vector<8x32xf32>
    %26 = arith.mulf %23, %25 : vector<8x32xf32>
    %27 = vector.shape_cast %5 : vector<32xf32> to vector<1x32xf32>
    %28 = vector.broadcast %27 : vector<1x32xf32> to vector<8x32xf32>
    %29 = arith.addf %26, %28 : vector<8x32xf32>
    %c0_10 = arith.constant 0 : index
    %c0_11 = arith.constant 0 : index
    %30 = vector.load %arg4[%c0_10, %c0_11] : memref<32x96xf32, #tpu.memory_space<vmem>>, vector<32x96xf32>
    %cst_12 = arith.constant dense<0.000000e+00> : vector<8x96xf32>
    %31 = tpu.matmul %29, %30, %cst_12 {dimension_numbers = #tpu.dot_dimension_numbers<[1], [0], [0], [1], [0, 0, 1, 1], [], []>} : vector<8x32xf32>, vector<32x96xf32>, vector<8x96xf32> -> vector<8x96xf32>
    %c0_13 = arith.constant 0 : index
    %c0_14 = arith.constant 0 : index
    %32 = vector.load %arg5[%c0_13, %c0_14] : memref<1x96xf32, #tpu.memory_space<vmem>>, vector<1x96xf32>
    %33 = vector.shape_cast %32 : vector<1x96xf32> to vector<96xf32>
    %34 = vector.shape_cast %33 : vector<96xf32> to vector<1x96xf32>
    %35 = vector.broadcast %34 : vector<1x96xf32> to vector<8x96xf32>
    %36 = arith.addf %31, %35 : vector<8x96xf32>
    %c0_15 = arith.constant 0 : index
    %c0_16 = arith.constant 0 : index
    %37 = vector.load %arg15[%c0_15, %c0_16] : memref<8x96xf32, #tpu.memory_space<vmem>>, vector<8x96xf32>
    tpu.vector_store %arg15[%c0_15, %c0_16], %36 {strides = array<i32>} : memref<8x96xf32, #tpu.memory_space<vmem>>, vector<8x96xf32>,
    %c0_17 = arith.constant 0 : index
    %c0_18 = arith.constant 0 : index
    %38 = vector.load %arg15[%c0_17, %c0_18] : memref<8x96xf32, #tpu.memory_space<vmem>>, vector<8x8xf32>
    %c0_19 = arith.constant 0 : index
    %c32 = arith.constant 32 : index
    %39 = vector.load %arg15[%c0_19, %c32] : memref<8x96xf32, #tpu.memory_space<vmem>>, vector<8x8xf32>
    %c0_20 = arith.constant 0 : index
    %c64 = arith.constant 64 : index
    %40 = vector.load %arg15[%c0_20, %c64] : memref<8x96xf32, #tpu.memory_space<vmem>>, vector<8x8xf32>
    %41 = tpu.transpose %39, [1, 0] : vector<8x8xf32> -> vector<8x8xf32>
    %cst_21 = arith.constant dense<0.000000e+00> : vector<8x8xf32>
    %42 = tpu.matmul %38, %41, %cst_21 {dimension_numbers = #tpu.dot_dimension_numbers<[1], [0], [0], [1], [0, 0, 1, 1], [], []>} : vector<8x8xf32>, vector<8x8xf32>, vector<8x8xf32> -> vector<8x8xf32>
    %cst_22 = arith.constant dense<0xFF800000> : vector<8xf32>
    %43 = vector.multi_reduction <maximumf>, %42, %cst_22 [1] : vector<8x8xf32> to vector<8xf32>
    %44 = vector.shape_cast %43 : vector<8xf32> to vector<8x1xf32>
    %45 = vector.broadcast %44 : vector<8x1xf32> to vector<8x8xf32>
    %46 = arith.subf %42, %45 : vector<8x8xf32>
    %47 = math.exp %46 : vector<8x8xf32>
    %cst_23 = arith.constant dense<0.000000e+00> : vector<8xf32>
    %48 = vector.multi_reduction <add>, %47, %cst_23 [1] : vector<8x8xf32> to vector<8xf32>
    %49 = vector.shape_cast %48 : vector<8xf32> to vector<8x1xf32>
    %50 = vector.broadcast %49 : vector<8x1xf32> to vector<8x8xf32>
    %51 = arith.divf %47, %50 : vector<8x8xf32>
    %cst_24 = arith.constant dense<0.000000e+00> : vector<8x8xf32>
    %52 = tpu.matmul %51, %40, %cst_24 {dimension_numbers = #tpu.dot_dimension_numbers<[1], [0], [0], [1], [0, 0, 1, 1], [], []>} : vector<8x8xf32>, vector<8x8xf32>, vector<8x8xf32> -> vector<8x8xf32>
    %c0_25 = arith.constant 0 : index
    %c0_26 = arith.constant 0 : index
    %53 = vector.load %arg16[%c0_25, %c0_26] : memref<8x32xf32, #tpu.memory_space<vmem>>, vector<8x8xf32>
    tpu.vector_store %arg16[%c0_25, %c0_26], %52 {strides = array<i32>} : memref<8x32xf32, #tpu.memory_space<vmem>>, vector<8x8xf32>,
    %c0_27 = arith.constant 0 : index
    %c8 = arith.constant 8 : index
    %54 = vector.load %arg15[%c0_27, %c8] : memref<8x96xf32, #tpu.memory_space<vmem>>, vector<8x8xf32>
    %c0_28 = arith.constant 0 : index
    %c40 = arith.constant 40 : index
    %55 = vector.load %arg15[%c0_28, %c40] : memref<8x96xf32, #tpu.memory_space<vmem>>, vector<8x8xf32>
    %c0_29 = arith.constant 0 : index
    %c72 = arith.constant 72 : index
    %56 = vector.load %arg15[%c0_29, %c72] : memref<8x96xf32, #tpu.memory_space<vmem>>, vector<8x8xf32>
    %57 = tpu.transpose %55, [1, 0] : vector<8x8xf32> -> vector<8x8xf32>
    %cst_30 = arith.constant dense<0.000000e+00> : vector<8x8xf32>
    %58 = tpu.matmul %54, %57, %cst_30 {dimension_numbers = #tpu.dot_dimension_numbers<[1], [0], [0], [1], [0, 0, 1, 1], [], []>} : vector<8x8xf32>, vector<8x8xf32>, vector<8x8xf32> -> vector<8x8xf32>
    %cst_31 = arith.constant dense<0xFF800000> : vector<8xf32>
    %59 = vector.multi_reduction <maximumf>, %58, %cst_31 [1] : vector<8x8xf32> to vector<8xf32>
    %60 = vector.shape_cast %59 : vector<8xf32> to vector<8x1xf32>
    %61 = vector.broadcast %60 : vector<8x1xf32> to vector<8x8xf32>
    %62 = arith.subf %58, %61 : vector<8x8xf32>
    %63 = math.exp %62 : vector<8x8xf32>
    %cst_32 = arith.constant dense<0.000000e+00> : vector<8xf32>
    %64 = vector.multi_reduction <add>, %63, %cst_32 [1] : vector<8x8xf32> to vector<8xf32>
    %65 = vector.shape_cast %64 : vector<8xf32> to vector<8x1xf32>
    %66 = vector.broadcast %65 : vector<8x1xf32> to vector<8x8xf32>
    %67 = arith.divf %63, %66 : vector<8x8xf32>
    %cst_33 = arith.constant dense<0.000000e+00> : vector<8x8xf32>
    %68 = tpu.matmul %67, %56, %cst_33 {dimension_numbers = #tpu.dot_dimension_numbers<[1], [0], [0], [1], [0, 0, 1, 1], [], []>} : vector<8x8xf32>, vector<8x8xf32>, vector<8x8xf32> -> vector<8x8xf32>
    %c0_34 = arith.constant 0 : index
    %c8_35 = arith.constant 8 : index
    %69 = vector.load %arg16[%c0_34, %c8_35] : memref<8x32xf32, #tpu.memory_space<vmem>>, vector<8x8xf32>
    tpu.vector_store %arg16[%c0_34, %c8_35], %68 {strides = array<i32>} : memref<8x32xf32, #tpu.memory_space<vmem>>, vector<8x8xf32>,
    %c0_36 = arith.constant 0 : index
    %c16 = arith.constant 16 : index
    %70 = vector.load %arg15[%c0_36, %c16] : memref<8x96xf32, #tpu.memory_space<vmem>>, vector<8x8xf32>
    %c0_37 = arith.constant 0 : index
    %c48 = arith.constant 48 : index
    %71 = vector.load %arg15[%c0_37, %c48] : memref<8x96xf32, #tpu.memory_space<vmem>>, vector<8x8xf32>
    %c0_38 = arith.constant 0 : index
    %c80 = arith.constant 80 : index
    %72 = vector.load %arg15[%c0_38, %c80] : memref<8x96xf32, #tpu.memory_space<vmem>>, vector<8x8xf32>
    %73 = tpu.transpose %71, [1, 0] : vector<8x8xf32> -> vector<8x8xf32>
    %cst_39 = arith.constant dense<0.000000e+00> : vector<8x8xf32>
    %74 = tpu.matmul %70, %73, %cst_39 {dimension_numbers = #tpu.dot_dimension_numbers<[1], [0], [0], [1], [0, 0, 1, 1], [], []>} : vector<8x8xf32>, vector<8x8xf32>, vector<8x8xf32> -> vector<8x8xf32>
    %cst_40 = arith.constant dense<0xFF800000> : vector<8xf32>
    %75 = vector.multi_reduction <maximumf>, %74, %cst_40 [1] : vector<8x8xf32> to vector<8xf32>
    %76 = vector.shape_cast %75 : vector<8xf32> to vector<8x1xf32>
    %77 = vector.broadcast %76 : vector<8x1xf32> to vector<8x8xf32>
    %78 = arith.subf %74, %77 : vector<8x8xf32>
    %79 = math.exp %78 : vector<8x8xf32>
    %cst_41 = arith.constant dense<0.000000e+00> : vector<8xf32>
    %80 = vector.multi_reduction <add>, %79, %cst_41 [1] : vector<8x8xf32> to vector<8xf32>
    %81 = vector.shape_cast %80 : vector<8xf32> to vector<8x1xf32>
    %82 = vector.broadcast %81 : vector<8x1xf32> to vector<8x8xf32>
    %83 = arith.divf %79, %82 : vector<8x8xf32>
    %cst_42 = arith.constant dense<0.000000e+00> : vector<8x8xf32>
    %84 = tpu.matmul %83, %72, %cst_42 {dimension_numbers = #tpu.dot_dimension_numbers<[1], [0], [0], [1], [0, 0, 1, 1], [], []>} : vector<8x8xf32>, vector<8x8xf32>, vector<8x8xf32> -> vector<8x8xf32>
    %c0_43 = arith.constant 0 : index
    %c16_44 = arith.constant 16 : index
    %85 = vector.load %arg16[%c0_43, %c16_44] : memref<8x32xf32, #tpu.memory_space<vmem>>, vector<8x8xf32>
    tpu.vector_store %arg16[%c0_43, %c16_44], %84 {strides = array<i32>} : memref<8x32xf32, #tpu.memory_space<vmem>>, vector<8x8xf32>,
    %c0_45 = arith.constant 0 : index
    %c24 = arith.constant 24 : index
    %86 = vector.load %arg15[%c0_45, %c24] : memref<8x96xf32, #tpu.memory_space<vmem>>, vector<8x8xf32>
    %c0_46 = arith.constant 0 : index
    %c56 = arith.constant 56 : index
    %87 = vector.load %arg15[%c0_46, %c56] : memref<8x96xf32, #tpu.memory_space<vmem>>, vector<8x8xf32>
    %c0_47 = arith.constant 0 : index
    %c88 = arith.constant 88 : index
    %88 = vector.load %arg15[%c0_47, %c88] : memref<8x96xf32, #tpu.memory_space<vmem>>, vector<8x8xf32>
    %89 = tpu.transpose %87, [1, 0] : vector<8x8xf32> -> vector<8x8xf32>
    %cst_48 = arith.constant dense<0.000000e+00> : vector<8x8xf32>
    %90 = tpu.matmul %86, %89, %cst_48 {dimension_numbers = #tpu.dot_dimension_numbers<[1], [0], [0], [1], [0, 0, 1, 1], [], []>} : vector<8x8xf32>, vector<8x8xf32>, vector<8x8xf32> -> vector<8x8xf32>
    %cst_49 = arith.constant dense<0xFF800000> : vector<8xf32>
    %91 = vector.multi_reduction <maximumf>, %90, %cst_49 [1] : vector<8x8xf32> to vector<8xf32>
    %92 = vector.shape_cast %91 : vector<8xf32> to vector<8x1xf32>
    %93 = vector.broadcast %92 : vector<8x1xf32> to vector<8x8xf32>
    %94 = arith.subf %90, %93 : vector<8x8xf32>
    %95 = math.exp %94 : vector<8x8xf32>
    %cst_50 = arith.constant dense<0.000000e+00> : vector<8xf32>
    %96 = vector.multi_reduction <add>, %95, %cst_50 [1] : vector<8x8xf32> to vector<8xf32>
    %97 = vector.shape_cast %96 : vector<8xf32> to vector<8x1xf32>
    %98 = vector.broadcast %97 : vector<8x1xf32> to vector<8x8xf32>
    %99 = arith.divf %95, %98 : vector<8x8xf32>
    %cst_51 = arith.constant dense<0.000000e+00> : vector<8x8xf32>
    %100 = tpu.matmul %99, %88, %cst_51 {dimension_numbers = #tpu.dot_dimension_numbers<[1], [0], [0], [1], [0, 0, 1, 1], [], []>} : vector<8x8xf32>, vector<8x8xf32>, vector<8x8xf32> -> vector<8x8xf32>
    %c0_52 = arith.constant 0 : index
    %c24_53 = arith.constant 24 : index
    %101 = vector.load %arg16[%c0_52, %c24_53] : memref<8x32xf32, #tpu.memory_space<vmem>>, vector<8x8xf32>
    tpu.vector_store %arg16[%c0_52, %c24_53], %100 {strides = array<i32>} : memref<8x32xf32, #tpu.memory_space<vmem>>, vector<8x8xf32>,
    %c0_54 = arith.constant 0 : index
    %c0_55 = arith.constant 0 : index
    %102 = vector.load %arg16[%c0_54, %c0_55] : memref<8x32xf32, #tpu.memory_space<vmem>>, vector<8x32xf32>
    %c0_56 = arith.constant 0 : index
    %c0_57 = arith.constant 0 : index
    %103 = vector.load %arg6[%c0_56, %c0_57] : memref<32x32xf32, #tpu.memory_space<vmem>>, vector<32x32xf32>
    %cst_58 = arith.constant dense<0.000000e+00> : vector<8x32xf32>
    %104 = tpu.matmul %102, %103, %cst_58 {dimension_numbers = #tpu.dot_dimension_numbers<[1], [0], [0], [1], [0, 0, 1, 1], [], []>} : vector<8x32xf32>, vector<32x32xf32>, vector<8x32xf32> -> vector<8x32xf32>
    %c0_59 = arith.constant 0 : index
    %c0_60 = arith.constant 0 : index
    %105 = vector.load %arg7[%c0_59, %c0_60] : memref<1x32xf32, #tpu.memory_space<vmem>>, vector<1x32xf32>
    %106 = vector.shape_cast %105 : vector<1x32xf32> to vector<32xf32>
    %107 = vector.shape_cast %106 : vector<32xf32> to vector<1x32xf32>
    %108 = vector.broadcast %107 : vector<1x32xf32> to vector<8x32xf32>
    %109 = arith.addf %104, %108 : vector<8x32xf32>
    %110 = arith.addf %109, %1 : vector<8x32xf32>
    %c0_61 = arith.constant 0 : index
    %c0_62 = arith.constant 0 : index
    %111 = vector.load %arg8[%c0_61, %c0_62] : memref<1x32xf32, #tpu.memory_space<vmem>>, vector<1x32xf32>
    %112 = vector.shape_cast %111 : vector<1x32xf32> to vector<32xf32>
    %c0_63 = arith.constant 0 : index
    %c0_64 = arith.constant 0 : index
    %113 = vector.load %arg9[%c0_63, %c0_64] : memref<1x32xf32, #tpu.memory_space<vmem>>, vector<1x32xf32>
    %114 = vector.shape_cast %113 : vector<1x32xf32> to vector<32xf32>
    %cst_65 = arith.constant dense<0.000000e+00> : vector<8xf32>
    %115 = vector.multi_reduction <add>, %110, %cst_65 [1] : vector<8x32xf32> to vector<8xf32>
    %116 = vector.shape_cast %115 : vector<8xf32> to vector<8x1xf32>
    %cst_66 = arith.constant 3.200000e+01 : f32
    %117 = vector.broadcast %cst_66 : f32 to vector<8x1xf32>
    %118 = arith.divf %116, %117 : vector<8x1xf32>
    %119 = vector.broadcast %118 : vector<8x1xf32> to vector<8x32xf32>
    %120 = arith.subf %110, %119 : vector<8x32xf32>
    %121 = arith.mulf %120, %120 : vector<8x32xf32>
    %cst_67 = arith.constant dense<0.000000e+00> : vector<8xf32>
    %122 = vector.multi_reduction <add>, %121, %cst_67 [1] : vector<8x32xf32> to vector<8xf32>
    %123 = vector.shape_cast %122 : vector<8xf32> to vector<8x1xf32>
    %cst_68 = arith.constant 3.200000e+01 : f32
    %124 = vector.broadcast %cst_68 : f32 to vector<8x1xf32>
    %125 = arith.divf %123, %124 : vector<8x1xf32>
    %126 = vector.broadcast %118 : vector<8x1xf32> to vector<8x32xf32>
    %127 = arith.subf %110, %126 : vector<8x32xf32>
    %cst_69 = arith.constant 9.99999997E-7 : f32
    %128 = vector.broadcast %cst_69 : f32 to vector<8x1xf32>
    %129 = arith.addf %125, %128 : vector<8x1xf32>
    %130 = math.rsqrt %129 : vector<8x1xf32>
    %131 = vector.broadcast %130 : vector<8x1xf32> to vector<8x32xf32>
    %132 = arith.mulf %127, %131 : vector<8x32xf32>
    %133 = vector.shape_cast %112 : vector<32xf32> to vector<1x32xf32>
    %134 = vector.broadcast %133 : vector<1x32xf32> to vector<8x32xf32>
    %135 = arith.mulf %132, %134 : vector<8x32xf32>
    %136 = vector.shape_cast %114 : vector<32xf32> to vector<1x32xf32>
    %137 = vector.broadcast %136 : vector<1x32xf32> to vector<8x32xf32>
    %138 = arith.addf %135, %137 : vector<8x32xf32>
    %c0_70 = arith.constant 0 : index
    %c0_71 = arith.constant 0 : index
    %139 = vector.load %arg11[%c0_70, %c0_71] : memref<1x64xf32, #tpu.memory_space<vmem>>, vector<1x64xf32>
    %140 = vector.shape_cast %139 : vector<1x64xf32> to vector<64xf32>
    %cst_72 = arith.constant 0.000000e+00 : f32
    %141 = vector.broadcast %cst_72 : f32 to vector<8x32xf32>
    %c0_73 = arith.constant 0 : index
    %c0_74 = arith.constant 0 : index
    %142 = vector.load %arg10[%c0_73, %c0_74] : memref<32x64xf32, #tpu.memory_space<vmem>>, vector<32x64xf32>
    %cst_75 = arith.constant dense<0.000000e+00> : vector<8x64xf32>
    %143 = tpu.matmul %138, %142, %cst_75 {dimension_numbers = #tpu.dot_dimension_numbers<[1], [0], [0], [1], [0, 0, 1, 1], [], []>} : vector<8x32xf32>, vector<32x64xf32>, vector<8x64xf32> -> vector<8x64xf32>
    %144 = vector.shape_cast %140 : vector<64xf32> to vector<1x64xf32>
    %145 = vector.broadcast %144 : vector<1x64xf32> to vector<8x64xf32>
    %146 = arith.addf %143, %145 : vector<8x64xf32>
    %cst_76 = arith.constant 5.000000e-01 : f32
    %147 = vector.broadcast %cst_76 : f32 to vector<8x64xf32>
    %148 = arith.mulf %147, %146 : vector<8x64xf32>
    %cst_77 = arith.constant 0.707106769 : f32
    %149 = vector.broadcast %cst_77 : f32 to vector<8x64xf32>
    %150 = arith.mulf %146, %149 : vector<8x64xf32>
    %cst_78 = arith.constant 0.000000e+00 : f32
    %151 = vector.broadcast %cst_78 : f32 to vector<8x64xf32>
    %152 = arith.cmpf oge, %150, %151 : vector<8x64xf32>
    %cst_79 = arith.constant 1.000000e+00 : f32
    %cst_80 = arith.constant -1.000000e+00 : f32
    %153 = vector.broadcast %cst_79 : f32 to vector<8x64xf32>
    %154 = vector.broadcast %cst_80 : f32 to vector<8x64xf32>
    %155 = arith.select %152, %153, %154 : vector<8x64xi1>, vector<8x64xf32>
    %156 = math.absf %150 : vector<8x64xf32>
    %cst_81 = arith.constant 0.327591091 : f32
    %157 = vector.broadcast %cst_81 : f32 to vector<8x64xf32>
    %158 = arith.mulf %157, %156 : vector<8x64xf32>
    %cst_82 = arith.constant 1.000000e+00 : f32
    %159 = vector.broadcast %cst_82 : f32 to vector<8x64xf32>
    %160 = arith.addf %159, %158 : vector<8x64xf32>
    %cst_83 = arith.constant 1.000000e+00 : f32
    %161 = vector.broadcast %cst_83 : f32 to vector<8x64xf32>
    %162 = arith.divf %161, %160 : vector<8x64xf32>
    %cst_84 = arith.constant 1.06140542 : f32
    %163 = vector.broadcast %cst_84 : f32 to vector<8x64xf32>
    %164 = arith.mulf %163, %162 : vector<8x64xf32>
    %cst_85 = arith.constant -1.45315206 : f32
    %165 = vector.broadcast %cst_85 : f32 to vector<8x64xf32>
    %166 = arith.addf %164, %165 : vector<8x64xf32>
    %167 = arith.mulf %166, %162 : vector<8x64xf32>
    %cst_86 = arith.constant 1.42141378 : f32
    %168 = vector.broadcast %cst_86 : f32 to vector<8x64xf32>
    %169 = arith.addf %167, %168 : vector<8x64xf32>
    %170 = arith.mulf %169, %162 : vector<8x64xf32>
    %cst_87 = arith.constant -0.284496725 : f32
    %171 = vector.broadcast %cst_87 : f32 to vector<8x64xf32>
    %172 = arith.addf %170, %171 : vector<8x64xf32>
    %173 = arith.mulf %172, %162 : vector<8x64xf32>
    %cst_88 = arith.constant 0.254829586 : f32
    %174 = vector.broadcast %cst_88 : f32 to vector<8x64xf32>
    %175 = arith.addf %173, %174 : vector<8x64xf32>
    %176 = arith.mulf %175, %162 : vector<8x64xf32>
    %cst_89 = arith.constant 0.000000e+00 : f32
    %177 = vector.broadcast %cst_89 : f32 to vector<8x64xf32>
    %178 = arith.subf %177, %156 : vector<8x64xf32>
    %179 = arith.mulf %178, %156 : vector<8x64xf32>
    %180 = math.exp %179 : vector<8x64xf32>
    %181 = arith.mulf %176, %180 : vector<8x64xf32>
    %cst_90 = arith.constant 1.000000e+00 : f32
    %182 = vector.broadcast %cst_90 : f32 to vector<8x64xf32>
    %183 = arith.subf %182, %181 : vector<8x64xf32>
    %184 = arith.mulf %155, %183 : vector<8x64xf32>
    %cst_91 = arith.constant 1.000000e+00 : f32
    %185 = vector.broadcast %cst_91 : f32 to vector<8x64xf32>
    %186 = arith.addf %185, %184 : vector<8x64xf32>
    %187 = arith.mulf %148, %186 : vector<8x64xf32>
    %c0_92 = arith.constant 0 : index
    %c0_93 = arith.constant 0 : index
    %188 = vector.load %arg12[%c0_92, %c0_93] : memref<64x32xf32, #tpu.memory_space<vmem>>, vector<64x32xf32>
    %cst_94 = arith.constant dense<0.000000e+00> : vector<8x32xf32>
    %189 = tpu.matmul %187, %188, %cst_94 {dimension_numbers = #tpu.dot_dimension_numbers<[1], [0], [0], [1], [0, 0, 1, 1], [], []>} : vector<8x64xf32>, vector<64x32xf32>, vector<8x32xf32> -> vector<8x32xf32>
    %190 = arith.addf %141, %189 : vector<8x32xf32>
    %c0_95 = arith.constant 0 : index
    %c0_96 = arith.constant 0 : index
    %191 = vector.load %arg13[%c0_95, %c0_96] : memref<1x32xf32, #tpu.memory_space<vmem>>, vector<1x32xf32>
    %192 = vector.shape_cast %191 : vector<1x32xf32> to vector<32xf32>
    %193 = vector.shape_cast %192 : vector<32xf32> to vector<1x32xf32>
    %194 = vector.broadcast %193 : vector<1x32xf32> to vector<8x32xf32>
    %195 = arith.addf %190, %194 : vector<8x32xf32>
    %196 = arith.addf %110, %195 : vector<8x32xf32>
    %197 = vector.shape_cast %196 : vector<8x32xf32> to vector<1x8x32xf32>
    %c0_97 = arith.constant 0 : index
    %c0_98 = arith.constant 0 : index
    %c0_99 = arith.constant 0 : index
    %198 = vector.load %arg14[%c0_97, %c0_98, %c0_99] : memref<1x8x32xf32, #tpu.memory_space<vmem>>, vector<1x8x32xf32>
    tpu.vector_store %arg14[%c0_97, %c0_98, %c0_99], %197 {strides = array<i32>} : memref<1x8x32xf32, #tpu.memory_space<vmem>>, vector<1x8x32xf32>,
    return
  }
  func.func @transform_0(%arg0: i32) -> (i32, i32, i32) {
    %c0_i32 = arith.constant 0 : i32
    %c0_i32_0 = arith.constant 0 : i32
    %c0_i32_1 = arith.constant 0 : i32
    return %arg0, %c0_i32, %c0_i32_0 : i32, i32, i32
  }
  func.func @transform_1(%arg0: i32) -> (i32, i32) {
    %c0_i32 = arith.constant 0 : i32
    %c0_i32_0 = arith.constant 0 : i32
    %c0_i32_1 = arith.constant 0 : i32
    return %c0_i32, %c0_i32_0 : i32, i32
  }
  func.func @transform_2(%arg0: i32) -> (i32, i32) {
    %c0_i32 = arith.constant 0 : i32
    %c0_i32_0 = arith.constant 0 : i32
    %c0_i32_1 = arith.constant 0 : i32
    return %c0_i32, %c0_i32_0 : i32, i32
  }
  func.func @transform_3(%arg0: i32) -> (i32, i32) {
    %c0_i32 = arith.constant 0 : i32
    %c0_i32_0 = arith.constant 0 : i32
    %c0_i32_1 = arith.constant 0 : i32
    return %c0_i32, %c0_i32_0 : i32, i32
  }
  func.func @transform_4(%arg0: i32) -> (i32, i32) {
    %c0_i32 = arith.constant 0 : i32
    %c0_i32_0 = arith.constant 0 : i32
    %c0_i32_1 = arith.constant 0 : i32
    return %c0_i32, %c0_i32_0 : i32, i32
  }
  func.func @transform_5(%arg0: i32) -> (i32, i32) {
    %c0_i32 = arith.constant 0 : i32
    %c0_i32_0 = arith.constant 0 : i32
    %c0_i32_1 = arith.constant 0 : i32
    return %c0_i32, %c0_i32_0 : i32, i32
  }
  func.func @transform_6(%arg0: i32) -> (i32, i32) {
    %c0_i32 = arith.constant 0 : i32
    %c0_i32_0 = arith.constant 0 : i32
    %c0_i32_1 = arith.constant 0 : i32
    return %c0_i32, %c0_i32_0 : i32, i32
  }
  func.func @transform_7(%arg0: i32) -> (i32, i32) {
    %c0_i32 = arith.constant 0 : i32
    %c0_i32_0 = arith.constant 0 : i32
    %c0_i32_1 = arith.constant 0 : i32
    return %c0_i32, %c0_i32_0 : i32, i32
  }
  func.func @transform_8(%arg0: i32) -> (i32, i32) {
    %c0_i32 = arith.constant 0 : i32
    %c0_i32_0 = arith.constant 0 : i32
    %c0_i32_1 = arith.constant 0 : i32
    return %c0_i32, %c0_i32_0 : i32, i32
  }
  func.func @transform_9(%arg0: i32) -> (i32, i32) {
    %c0_i32 = arith.constant 0 : i32
    %c0_i32_0 = arith.constant 0 : i32
    %c0_i32_1 = arith.constant 0 : i32
    return %c0_i32, %c0_i32_0 : i32, i32
  }
  func.func @transform_10(%arg0: i32) -> (i32, i32) {
    %c0_i32 = arith.constant 0 : i32
    %c0_i32_0 = arith.constant 0 : i32
    %c0_i32_1 = arith.constant 0 : i32
    return %c0_i32, %c0_i32_0 : i32, i32
  }
  func.func @transform_11(%arg0: i32) -> (i32, i32) {
    %c0_i32 = arith.constant 0 : i32
    %c0_i32_0 = arith.constant 0 : i32
    %c0_i32_1 = arith.constant 0 : i32
    return %c0_i32, %c0_i32_0 : i32, i32
  }
  func.func @transform_12(%arg0: i32) -> (i32, i32) {
    %c0_i32 = arith.constant 0 : i32
    %c0_i32_0 = arith.constant 0 : i32
    %c0_i32_1 = arith.constant 0 : i32
    return %c0_i32, %c0_i32_0 : i32, i32
  }
  func.func @transform_13(%arg0: i32) -> (i32, i32, i32) {
    %c0_i32 = arith.constant 0 : i32
    %c0_i32_0 = arith.constant 0 : i32
    %c0_i32_1 = arith.constant 0 : i32
    return %arg0, %c0_i32, %c0_i32_0 : i32, i32, i32
  }
}

</mosaic_0001>

<bundles_post_ra>
// kernel: tpu_custom_call.1
= control target key start
LH: loop header
LB: loop body
LE: loop exit
PB: predicated region body
PF: predicated region fallthrough
CT: control target
= control target key end

     0   :  { %18 = vsyncpa [#allocation5], 0  ;;  %s2479_s0 = inlined_call_operand.hbm [shape: f32[2,8,32], index: 0, kind: input, shape index: {}]   ;;  %s2480_s1 = inlined_call_operand.vmem [shape: f32[1,32], index: 1, kind: input, shape index: {}]   ;;  %s2481_s2 = inlined_call_operand.vmem [shape: f32[1,32], index: 2, kind: input, shape index: {}]   ;;  %s2482_s3 = inlined_call_operand.vmem [shape: f32[32,96], index: 3, kind: input, shape index: {}]   ;;  %s2483_s4 = inlined_call_operand.vmem [shape: f32[1,96], index: 4, kind: input, shape index: {}]   ;;  %s2484_s5 = inlined_call_operand.vmem [shape: f32[32,32], index: 5, kind: input, shape index: {}]   ;;  %s2485_s6 = inlined_call_operand.vmem [shape: f32[1,32], index: 6, kind: input, shape index: {}]   ;;  %s2486_s7 = inlined_call_operand.vmem [shape: f32[1,32], index: 7, kind: input, shape index: {}]   ;;  %s2487_s8 = inlined_call_operand.vmem [shape: f32[1,32], index: 8, kind: input, shape index: {}]   ;;  %s2488_s9 = inlined_call_operand.vmem [shape: f32[32,64], index: 9, kind: input, shape index: {}]   ;;  %s2489_s10 = inlined_call_operand.vmem [shape: f32[1,64], index: 10, kind: input, shape index: {}]   ;;  %s2490_s11 = inlined_call_operand.vmem [shape: f32[64,32], index: 11, kind: input, shape index: {}]   ;;  %s2491_s12 = inlined_call_operand.vmem [shape: f32[1,32], index: 12, kind: input, shape index: {}]   ;;  %s2492_s13 = inlined_call_operand.hbm [shape: f32[2,8,32], index: 13, kind: output, shape index: {}]  }
   0x1   :  { %20 = vsyncpa [#allocation5 + $0x1], 0 }
   0x2   :  { %21 = vsyncpa [#allocation6], 0 }
   0x3   :  { %23 = vsyncpa [#allocation6 + $0x1], 0  ;;  %s2135_s25 = smov 0   ;;  %s2137_s26 = smov 0  }
   0x4   :  { %s2139_s27 = smov 0   ;;  %s2141_s28 = smov 0  }
   0x5 LB: > { %2498 = sst [smem:[#allocation10_spill]] %s2031_s25  ;;  %s2156_s29 = sadd.s32 4294967295, %s2043_s28   ;;  %s2043_s28 = sphi %s2141_s28, %s2513_s28   ;;  %s2039_s27 = sphi %s2139_s27, %s2515_s27   ;;  %s2035_s26 = sphi %s2137_s26, %s2517_s26   ;;  %s2031_s25 = sphi %s2135_s25, %s2516_s25  }
   0x6   : > { %2499 = sst [smem:[#allocation11_spill]] %s2039_s27  ;;  %s1661_s30 = sadd.s32 4294967294, %s2043_s28  }
   0x7   : > { %s2160_s14 = sadd.s32 1, %s2043_s28   ;;  %s36_s15 = sadd.s32 1, %s2039_s27 }
   0x8   : > { %2500 = sst [smem:[#allocation12_spill]] %s2160_s14  ;;  %s33_s16 = ssub.s32 %s2043_s28, %s2160_s14 }
   0x9   : > { %p43_p0 = scmp.ne.s32.totalorder %s2039_s27, %s2035_s26  ;;  %p34_p1 = scmp.eq.s32.totalorder %s33_s16, 0 }
   0xa   : > { %p44_p2 = scmp.eq.s32.totalorder %s2043_s28, 0  ;;  %p49_p3 = scmp.ne.s32.totalorder %s2035_s26, %s2031_s25 }
   0xb   : > { %p50_p4 = scmp.eq.s32.totalorder %s2156_s29, 0  ;;  %p325_p7 = scmp.eq.s32.totalorder %s2156_s29, 1 }
   0xc   : > { %s2172_s17 = scalar_select %p34_p1, %s2039_s27, %s36_s15  }
   0xd   : > { %p2174_p5 = por %p44_p2, %p43_p0  ;;  %p2178_p6 = por %p50_p4, %p49_p3 }
   0xe   : > { %2501 = sst [smem:[#allocation13_spill]] %s2172_s17  ;;  %p331_p8 = scmp.eq.s32.totalorder %s1661_s30, 1 }
   0xf   : > { %p1871_p10 = scmp.lt.s32.totalorder %s2043_s28, 2  ;;  %p2185_p11 = por %p325_p7, %p43_p0 }
  0x10   : > { %p2189_p12 = por %p331_p8, %p49_p3  ;;  %s387_s22 = sand.u32 1, %s2039_s27  }
  0x11   : > { %s2504_s20 = scalar_select %p2185_p11, 1, 0 }
  0x12   : > { %s2505_s21 = scalar_select %p2189_p12, 1, 0 }
  0x13   : > { %s1665_s23 = sshll.u32 %s2043_s28, 7  ;;  %s1664_s24 = sshll.u32 %s387_s22, 3 }
  0x14   : > { %s2198_s17 = scalar_lea.hbm %s2479_s0, %s1665_s23  ;;  %s391_s30 = scalar_lea.vmem [#allocation4], %s1664_s24 }
  0x15   : > { %s398_s14 = sshll.u32 %s391_s30, 4  ;;  %p2202_p13 = pnand %p1871_p10, %p2174_p5  ;;  %s2206_s14 = int_to_ptr.vmem [resolvable:$true] %s398_s14 }
  0x16   : > { %s388_s15 = scalar_lea.sflag [#allocation5], %s387_s22  ;;  %s1947_s23 = scalar_lea.hbm %s2198_s17, 128 }
  0x17   : > { %p1948_p2 = scmp.ne.s32.totalorder %s2198_s17, %s1947_s23  ;;  %p1949_p3 = pneg %p2202_p13 }
  0x18   : > { %s1952_s16 = scalar_lea.hbm %s2479_s0, 256  ;;  %p1953_p5 = scmp.lt.u32.totalorder %s2198_s17, %s2479_s0 }
  0x19   : > { %p1950_p4 = pnand %p1949_p3, %p1948_p2  ;;  %p1954_p8 = scmp.lt.u32.totalorder %s1952_s16, %s1947_s23 }
  0x1a   : > { %p1956_p9 = scmp.lt.u32.totalorder %s1947_s23, %s2198_s17 }
  0x1b   : > { %p1951_p7 = pneg %p1950_p4  ;;  %p1955_p10 = por %p1954_p8, %p1953_p5 }
  0x1d   : > { %p1957_p0 = por %p1956_p9, %p1955_p10 }
  0x1f   : > { %p1958_p1 = pnand %p1957_p0, %p1951_p7 }
  0x21   : > { %1961 = shalt.err (!%p1958_p1)
}
  0x22   : > { %s1962_s22 = scalar_lea.vmem %s2206_s14, 128  ;;  %s2045_s18 = smov [#allocation4]  }
  0x23   : > { %p1963_p2 = scmp.ne.s32.totalorder %s2206_s14, %s1962_s22  ;;  %s1967_s24 = sshll.u32 %s2045_s18, 4  ;;  %s1968_s24 = int_to_ptr.vmem [resolvable:$false] %s1967_s24 }
  0x24   : > { %s1969_s27 = scalar_lea.vmem %s1968_s24, 256  ;;  %p1970_p11 = scmp.lt.s32.totalorder %s2206_s14, %s1968_s24 }
  0x25   : > { %p1965_p4 = pnand %p1963_p2, %p1949_p3  ;;  %p1971_p5 = scmp.lt.s32.totalorder %s1969_s27, %s1962_s22 }
  0x27   : > { %p1966_p12 = pneg %p1965_p4  ;;  %p1972_p8 = por %p1971_p5, %p1970_p11 }
  0x29   : > { %p1973_p9 = pnand %p1972_p8, %p1966_p12 }
  0x2b   : > { %1976 = shalt.err (!%p1973_p9)
}
  0x2c   : > { %1866 = dma.hbm_to_vmem [thread:$0]  (!%p2202_p13), %s2198_s17, 128, %s2206_s14, %s388_s15  }
  0x2d   : > { %p2507_p0 = scmp.lt.s32.totalorder %s2043_s28, 3  ;;  %p2508_p1 = scmp.ge.s32.totalorder %s2043_s28, 1 }
  0x2f   : > { %p404_p3 = pnand %p2508_p1, %p2507_p0 }
  0x30   : > { %s2240_s23 = sand.u32 (!%p404_p3), 1, %s2035_s26  }
  0x31   : > { %407 = sbr.rel (%p404_p3) target bundleno = 2609 (0xa31), region = 72  ;;  %s1667_s16 = sshll.u32 (!%p404_p3), %s2240_s23, 3 }
  0x32   : > { %s410_s30 = scalar_lea.sflag (!%p404_p3), [#allocation5], %s2240_s23  ;;  %s413_s25 = scalar_lea.vmem (!%p404_p3), [#allocation4], %s1667_s16 }
  0x38   : > { %2022 = dma.done.wait (%p2178_p6), %s410_s30, 128  }
  0x39   : > { %2024 = vsyncadd (%p2178_p6), %s410_s30, 4294967168  ;;  %vm459_vm0 = vcmask 261120   ;;  %v2250_v0 = vld [vmem:[%s413_s25] sm:$0xff]  ;;  %v488_v7 = vld [vmem:[%s2482_s3] sm:$0xff]  ;;  %v2046_v10 = vmov 0.0|0.0   ;;  %vm2047_vm1 = vmmov 0  }
  0x3a   : > { %v460_v1 = vsel %vm459_vm0, %v2250_v0, 0.0  ;;  %v489_v8 = vld [vmem:[%s2482_s3 + $0x8] sm:$0xff]  ;;  %v490_v9 = vld [vmem:[%s2482_s3 + $0x10] sm:$0xff]  ;;  %1829 = vmatprep.subr.bf16.mxu1 %v2046_v10  ;;  %v491_v12 = vld [vmem:[%s2482_s3 + $0x18] sm:$0xff]  ;;  %v2048_v13 = vmov 0.0   ;;  %vm572_vm2 = vcmask 785408  }
  0x3b   : > { %461 = vadd.xlane.f32.xlu0 %v460_v1  ;;  %v1830_v11 = vpack.c.bf16 %v489_v8, %v488_v7  ;;  %1745 = vmatprep.mubr.msk.f32.mxu1 %vm2047_vm1, %v2048_v13  ;;  %v1833_v14 = vpack.c.bf16 %v491_v12, %v490_v9  ;;  %v1669_v19 = vld [vmem:[%s2480_s1] ss:$0 sm:$0xff]  ;;  %s2049_s22 = smov 120   ;;  %s2050_s18 = smov 96   ;;  %vm578_vm3 = vcmask 64512   ;;  %vm912_vm4 = vcmask 130112  }
  0x3c   : > { %1758 = vmatprep.subr.mxu0 %v2048_v13  ;;  %1760 = vmatprep.mubr.msk.f32.mxu0 %vm2047_vm1, %v2048_v13  ;;  %v1670_v21 = vld [vmem:[%s2481_s2] ss:$0 sm:$0xff]  ;;  %s2051_s24 = smov 88   ;;  %s2052_s27 = smov 80   ;;  %vm1085_vm5 = vcmask 195712   ;;  %vm1258_vm6 = vcmask 261312  }
  0x3d   : > { %1831 = vmatpush3.bf16.msra.mxu1 %v1830_v11  ;;  %v1671_v24 = vld [vmem:[%s2483_s4] ss:$0 sm:$0xff]  ;;  %s2053_s30 = smov 112   ;;  %s2054_s25 = smov 72   ;;  %vm1501_vm8 = vcmask 523264  }
  0x3e   : > { %1832 = vmatprep.subr.bf16.mxu1 %v2046_v10  ;;  %s2055_s14 = smov 104   ;;  %s2056_s17 = smov 64  }
  0x3f   : > { %s2057_s19 = smov 48   ;;  %s2058_s15 = smov 40  }
  0x40   : > { %p2509_p11 = scmp.ne.s32.totalorder %s2504_s20, 0 }
  0x41   : > { %1834 = vmatpush3.bf16.msra.mxu1 %v1833_v14 }
  0x42   : > { %1748 = vmatprep.subr.mxu1 %v2048_v13 }
  0xc8   : > { %v462_v2 = vpop.xlane.xlu0 %461 }
  0xc9   : > { %v464_v3 = vmul.f32 0.03125, %v462_v2 }
  0xcb   : > { %v465_v4 = vsub.f32 %v2250_v0, %v464_v3 }
  0xcd   : > { %v466_v5 = vmul.f32 %v465_v4, %v465_v4 }
  0xcf   : > { %v467_v6 = vsel %vm459_vm0, %v466_v5, 0.0 }
  0xd0   : > { %468 = vadd.xlane.f32.xlu0 %v467_v6 }
 0x15d   : > { %v469_v15 = vpop.xlane.xlu0 %468 }
 0x15e   : > { %v470_v16 = vmul.f32 0.03125, %v469_v15 }
 0x160   : > { %v471_v17 = vadd.f32 1e-06, %v470_v16 }
 0x162   : > { %1923 = vrsqrt.f32 %v471_v17 }
 0x16c   : > { %v1924_v18 = vpop.eup %1923 }
 0x16d   : > { %v473_v20 = vmul.f32 %v1924_v18, %v465_v4 }
 0x16f   : > { %v480_v22 = vmul.f32 %v1669_v19, %v473_v20 }
 0x171   : > { %v487_v23 = vadd.f32 %v1670_v21, %v480_v22 }
 0x173   : > { %1746 = vmatmul.mubr.msk.f32.vlgmr.msra.gmra.mrb[0].mxu1 %vm459_vm0, %v487_v23 }
 0x174   : > { %1750 = vmatprep.mubr.msk.f32.mxu1 %vm2047_vm1, %v2048_v13 }
 0x246   : > { %v568_v25 = vpop.f32.mrb[0].mxu1 }
 0x247   : > { %v569_v26 = vadd.f32 %v1671_v24, %v568_v25  ;;  %v1747_v27 = vpop.f32.mrb[1].mxu1  ;;  %v1261_v25 = vld [vmem:[%s2484_s5] sm:$0xff] }
 0x249   : > { %573 = vst.msk [vmem:[#allocation2] sm:$0xff] %vm572_vm2, %v569_v26  ;;  %v1262_v26 = vld [vmem:[%s2484_s5 + $0x8] sm:$0xff] }
 0x24a   : > { %v1836_v27 = vpack.c.bf16 %v1262_v26, %v1261_v25 }
 0x250   : > { %v2288_v28 = vld [vmem:[#allocation2] sm:$0xff] }
 0x251   : > { %743 = vrot.lane.b32.xlu0 %v2288_v28, %s2049_s22  ;;  %576 = vrot.lane.b32.xlu1 %v2288_v28, %s2050_s18  ;;  %s2059_s22 = smov 56   ;;  %s2062_s18 = smov 24  }
 0x255   : > { %745 = vrot.lane.b32.xlu1 %v2288_v28, %s2051_s24 }
 0x259   : > { %918 = vrot.lane.b32.xlu1 %v2288_v28, %s2052_s27 }
 0x25d   : > { %916 = vrot.lane.b32.xlu1 %v2288_v28, %s2053_s30 }
 0x261   : > { %1091 = vrot.lane.b32.xlu1 %v2288_v28, %s2054_s25 }
 0x265   : > { %1089 = vrot.lane.b32.xlu1 %v2288_v28, %s2055_s14  ;;  %s1694_s14 = sshll.u32 %s2156_s29, 7  ;;  %s1578_s29 = scalar_lea.sflag [#allocation6], %s2240_s23 }
 0x2c3   : > { %v577_v29 = vpop.permute.xlu1 %576  ;;  %v744_v31 = vpop.permute.xlu0 %743 }
 0x2c4   : > { %1749 = vmatpush3.xpose.msk.msra.mxu1 %vm578_vm3, %v577_v29  ;;  %v1264_v29 = vld [vmem:[%s2484_s5 + $0x18] sm:$0xff] }
 0x2c5   : > { %1753 = vmatprep.subr.mxu1 %v2048_v13 }
 0x2c7   : > { %1751 = vmatmul.mubr.msk.f32.vlgmr.msra.gmra.mrb[2].mxu1 %vm578_vm3, %v2288_v28  ;;  %v746_v30 = vpop.permute.xlu1 %745 }
 0x2c8   : > { %1759 = vmatpush3.xpose.msk.msra.mxu0 %vm578_vm3, %v746_v30  ;;  %1755 = vmatprep.mubr.msk.f32.mxu1 %vm2047_vm1, %v2048_v13 }
 0x2c9   : > { %1768 = vmatprep.subr.mxu0 %v2048_v13 }
 0x2cb   : > { %1761 = vmatmul.mubr.msk.f32.vlgmr.msra.gmra.mrb[0].mxu0 %vm578_vm3, %v744_v31  ;;  %v919_v32 = vpop.permute.xlu1 %918 }
 0x2cc   : > { %1769 = vmatpush3.xpose.msk.msra.mxu0 %vm578_vm3, %v919_v32  ;;  %1770 = vmatprep.mubr.msk.f32.mxu0 %vm2047_vm1, %v2048_v13 }
 0x2cd   : > { %1778 = vmatprep.subr.mxu0 %v2048_v13 }
 0x2cf   : > { %v917_v33 = vpop.permute.xlu1 %916 }
 0x2d0   : > { %1771 = vmatmul.mubr.msk.f32.vlgmr.msra.gmra.mrb[2].mxu0 %vm578_vm3, %v917_v33 }
 0x2d1   : > { %1780 = vmatprep.mubr.msk.f32.mxu0 %vm2047_vm1, %v2048_v13 }
 0x2d3   : > { %v1092_v34 = vpop.permute.xlu1 %1091 }
 0x2d4   : > { %1779 = vmatpush3.xpose.msk.msra.mxu0 %vm578_vm3, %v1092_v34 }
 0x2d5   : > { %1835 = vmatprep.subr.bf16.mxu0 %v2046_v10 }
 0x2d7   : > { %v1090_v35 = vpop.permute.xlu1 %1089 }
 0x2d8   : > { %1781 = vmatmul.mubr.msk.f32.vlgmr.msra.gmra.mrb[4].mxu0 %vm578_vm3, %v1090_v35 }
 0x2d9   : > { %1796 = vmatprep.mubr.msk.f32.mxu0 %vm2047_vm1, %v2048_v13  ;;  %1837 = vmatpush3.bf16.msra.mxu0 %v1836_v27 }
 0x2da   : > { %1838 = vmatprep.subr.bf16.mxu0 %v2046_v10 }
 0x39a   : > { %v649_v36 = vpop.f32.mrb[2].mxu1 }
 0x39b   : > { %v1752_v37 = vpop.f32.mrb[3].mxu1  ;;  %v653_v38 = vsel %vm578_vm3, %v649_v36, -inf }
 0x39c   : > { %654 = vmax.xlane.f32.xlu1 %v653_v38 }
 0x39e   : > { %v817_v39 = vpop.f32.mrb[0].mxu0 }
 0x39f   : > { %v1762_v40 = vpop.f32.mrb[1].mxu0  ;;  %v821_v41 = vsel %vm578_vm3, %v817_v39, -inf }
 0x3a0   : > { %822 = vmax.xlane.f32.xlu0 %v821_v41  ;;  %v1685_v41 = vld [vmem:[%s2485_s6] ss:$0 sm:$0xff] }
 0x3a3   : > { %v990_v42 = vpop.f32.mrb[2].mxu0 }
 0x3a4   : > { %v1772_v43 = vpop.f32.mrb[3].mxu0  ;;  %v994_v44 = vsel %vm578_vm3, %v990_v42, -inf }
 0x3a5   : > { %995 = vmax.xlane.f32.xlu1 %v994_v44 }
 0x3ab   : > { %v1163_v45 = vpop.f32.mrb[4].mxu0 }
 0x3ac   : > { %v1782_v46 = vpop.f32.mrb[5].mxu0  ;;  %v1167_v47 = vsel %vm578_vm3, %v1163_v45, -inf }
 0x3ad   : > { %1168 = vmax.xlane.f32.xlu0 %v1167_v47 }
 0x3b6   : > { %664 = vrot.lane.b32.xlu1 %v2288_v28, %s2056_s17  ;;  %s455_s17 = scalar_lea.vmem [#allocation7], %s1667_s16  ;;  %s2064_s16 = smov [#allocation7]  }
 0x3b7   : > { %s1981_s27 = sshll.u32 %s2064_s16, 4  ;;  %s1982_s27 = int_to_ptr.vmem [resolvable:$false] %s1981_s27 }
 0x3b8   : > { %s1983_s30 = scalar_lea.vmem %s1982_s27, 256 }
 0x429   : > { %v655_v48 = vpop.xlane.xlu1 %654 }
 0x42a   : > { %v656_v49 = vsub.f32 %v649_v36, %v655_v48 }
 0x42c   : > { %v657_v50 = vmul.f32 1.442695, %v656_v49 }
 0x42d   : > { %v823_v51 = vpop.xlane.xlu0 %822 }
 0x42e   : > { %1925 = vpow2.f32 %v657_v50  ;;  %v824_v52 = vsub.f32 %v817_v39, %v823_v51  ;;  %v1376_v51 = vld [vmem:[%s2488_s9] sm:$0xff] }
 0x430   : > { %v825_v53 = vmul.f32 1.442695, %v824_v52 }
 0x432   : > { %1927 = vpow2.f32 %v825_v53  ;;  %v996_v54 = vpop.xlane.xlu1 %995  ;;  %v1378_v53 = vld [vmem:[%s2488_s9 + $0x10] sm:$0xff] }
 0x433   : > { %v997_v55 = vsub.f32 %v990_v42, %v996_v54  ;;  %v1379_v54 = vld [vmem:[%s2488_s9 + $0x18] sm:$0xff] }
 0x435   : > { %v998_v56 = vmul.f32 1.442695, %v997_v55  ;;  %v1845_v55 = vpack.c.bf16 %v1379_v54, %v1378_v53 }
 0x436   : > { %v665_v57 = vpop.permute.xlu1 %664 }
 0x437   : > { %1929 = vpow2.f32 %v998_v56  ;;  %1754 = vmatpush3.msra.mxu1 %v665_v57 }
 0x438   : > { %v1926_v58 = vpop.eup %1925  ;;  %1763 = vmatprep.subr.mxu1 %v2048_v13 }
 0x439   : > { %v659_v59 = vsel %vm578_vm3, %v1926_v58, 0.0 }
 0x43a   : > { %v1169_v60 = vpop.xlane.xlu0 %1168  ;;  %660 = vadd.xlane.f32.xlu1 %v659_v59 }
 0x43b   : > { %v1170_v61 = vsub.f32 %v1163_v45, %v1169_v60  ;;  %v1687_v60 = vld [vmem:[%s2486_s7] ss:$0 sm:$0xff] }
 0x43c   : > { %v1928_v62 = vpop.eup %1927 }
 0x43d   : > { %v1171_v63 = vmul.f32 1.442695, %v1170_v61  ;;  %v827_v1 = vsel %vm578_vm3, %v1928_v62, 0.0 }
 0x43e   : > { %828 = vadd.xlane.f32.xlu0 %v827_v1 }
 0x43f   : > { %1931 = vpow2.f32 %v1171_v63 }
 0x441   : > { %v1930_v2 = vpop.eup %1929 }
 0x442   : > { %v1000_v3 = vsel %vm578_vm3, %v1930_v2, 0.0 }
 0x443   : > { %1001 = vadd.xlane.f32.xlu1 %v1000_v3  ;;  %v1487_v3 = vld [vmem:[%s2490_s11 + $0x8] sm:$0xff] }
 0x449   : > { %v1932_v4 = vpop.eup %1931 }
 0x44a   : > { %v1173_v5 = vsel %vm578_vm3, %v1932_v4, 0.0 }
 0x44b   : > { %1174 = vadd.xlane.f32.xlu0 %v1173_v5  ;;  %v1488_v5 = vld [vmem:[%s2490_s11 + $0x10] sm:$0xff] }
 0x454   : > { %1005 = vrot.lane.b32.xlu1 %v2288_v28, %s2057_s19  ;;  %s1591_s19 = sshll.u32 %s455_s17, 4  ;;  %s2436_s19 = int_to_ptr.vmem [resolvable:$true] %s1591_s19 }
 0x455   : > { %s1977_s24 = scalar_lea.vmem %s2436_s19, 128  ;;  %p1984_p7 = scmp.lt.s32.totalorder %s2436_s19, %s1982_s27 }
 0x456   : > { %p1978_p6 = scmp.ne.s32.totalorder %s2436_s19, %s1977_s24  ;;  %p1985_p10 = scmp.lt.s32.totalorder %s1983_s30, %s1977_s24 }
 0x458   : > { %1178 = vrot.lane.b32.xlu1 %v2288_v28, %s2058_s15  ;;  %s2060_s15 = smov 8   ;;  %p1979_p12 = pnand %p1978_p6, %p2509_p11 }
 0x459   : > { %p1986_p2 = por %p1985_p10, %p1984_p7 }
 0x45a   : > { %p1980_p13 = pneg %p1979_p12 }
 0x45c   : > { %p1987_p4 = pnand %p1986_p2, %p1980_p13 }
 0x461   : > { %832 = vrot.lane.b32.xlu0 %v2288_v28, %s2059_s22  ;;  %v1263_v28 = vld [vmem:[%s2484_s5 + $0x10] sm:$0xff]  ;;  %s2061_s22 = smov 16  }
 0x462   : > { %v1839_v30 = vpack.c.bf16 %v1264_v29, %v1263_v28 }
 0x464   : > { %1840 = vmatpush3.bf16.msra.mxu0 %v1839_v30 }
 0x465   : > { %1847 = vmatprep.subr.bf16.mxu0 %v2046_v10 }
 0x4c7   : > { %v661_v6 = vpop.xlane.xlu1 %660 }
 0x4c8   : > { %1933 = vrcp.f32 %v661_v6  ;;  %v1489_v6 = vld [vmem:[%s2490_s11 + $0x18] sm:$0xff] }
 0x4cb   : > { %v829_v7 = vpop.xlane.xlu0 %828 }
 0x4cc   : > { %1935 = vrcp.f32 %v829_v7  ;;  %v1851_v7 = vpack.c.bf16 %v1489_v6, %v1488_v5 }
 0x4d0   : > { %v1002_v8 = vpop.xlane.xlu1 %1001 }
 0x4d1   : > { %1937 = vrcp.f32 %v1002_v8  ;;  %v1490_v8 = vld [vmem:[%s2490_s11 + $0x20] sm:$0xff] }
 0x4d2   : > { %v1934_v9 = vpop.eup %1933 }
 0x4d3   : > { %v663_v11 = vmul.f32 %v1934_v9, %v1926_v58  ;;  %v1491_v9 = vld [vmem:[%s2490_s11 + $0x28] sm:$0xff] }
 0x4d4   : > { %v1006_v16 = vpop.permute.xlu1 %1005 }
 0x4d5   : > { %1756 = vmatmul.mubr.msk.f32.vlgmr.msra.gmra.mrb[4].mxu1 %vm578_vm3, %v663_v11  ;;  %v1854_v11 = vpack.c.bf16 %v1491_v9, %v1490_v8 }
 0x4d6   : > { %1765 = vmatprep.mubr.msk.f32.mxu1 %vm2047_vm1, %v2048_v13  ;;  %v1936_v14 = vpop.eup %1935 }
 0x4d7   : > { %v831_v15 = vmul.f32 %v1936_v14, %v1928_v62  ;;  %v1688_v62 = vld [vmem:[%s2487_s8] ss:$0 sm:$0xff]  ;;  %v1493_v14 = vld [vmem:[%s2490_s11 + $0x38] sm:$0xff] }
 0x4d8   : > { %v1175_v12 = vpop.xlane.xlu0 %1174  ;;  %v1179_v20 = vpop.permute.xlu1 %1178 }
 0x4d9   : > { %1939 = vrcp.f32 %v1175_v12  ;;  %v1492_v12 = vld [vmem:[%s2490_s11 + $0x30] sm:$0xff] }
 0x4db   : > { %v1938_v18 = vpop.eup %1937 }
 0x4dc   : > { %v833_v17 = vpop.permute.xlu0 %832  ;;  %v1004_v19 = vmul.f32 %v1938_v18, %v1930_v2  ;;  %v1486_v2 = vld [vmem:[%s2490_s11] sm:$0xff] }
 0x4dd   : > { %1764 = vmatpush3.msra.mxu1 %v833_v17 }
 0x4de   : > { %1766 = vmatmul.mubr.msk.f32.vlgmr.msra.gmra.mrb[6].mxu1 %vm578_vm3, %v831_v15  ;;  %1773 = vmatprep.subr.mxu1 %v2048_v13  ;;  %v1857_v15 = vpack.c.bf16 %v1493_v14, %v1492_v12 }
 0x4df   : > { %1774 = vmatpush3.msra.mxu1 %v1006_v16  ;;  %1775 = vmatprep.mubr.msk.f32.mxu1 %vm2047_vm1, %v2048_v13  ;;  %v1689_v16 = vld [vmem:[%s2489_s10] ss:$0 sm:$0xff] }
 0x4e0   : > { %1783 = vmatprep.subr.mxu1 %v2048_v13 }
 0x4e2   : > { %1776 = vmatmul.mubr.msk.f32.vlgmr.msra.gmra.mrb[8].mxu1 %vm578_vm3, %v1004_v19 }
 0x4e3   : > { %v1940_v21 = vpop.eup %1939  ;;  %1784 = vmatpush3.msra.mxu1 %v1179_v20  ;;  %1785 = vmatprep.mubr.msk.f32.mxu1 %vm2047_vm1, %v2048_v13 }
 0x4e4   : > { %v1177_v22 = vmul.f32 %v1940_v21, %v1932_v4  ;;  %1841 = vmatprep.subr.bf16.mxu1 %v2046_v10  ;;  %v1848_v4 = vpack.c.bf16 %v1487_v3, %v1486_v2 }
 0x4e6   : > { %1786 = vmatmul.mubr.msk.f32.vlgmr.msra.gmra.mrb[10].mxu1 %vm578_vm3, %v1177_v22 }
 0x4e7   : > { %1807 = vmatprep.mubr.msk.f32.mxu1 %vm2047_vm1, %v2048_v13 }
 0x5a8   : > { %v736_v23 = vpop.f32.mrb[4].mxu1 }
 0x5a9   : > { %740 = vst.msk [vmem:[#allocation3] sm:$0xff] %vm578_vm3, %v736_v23  ;;  %v1757_v24 = vpop.f32.mrb[5].mxu1 }
 0x5b1   : > { %v904_v31 = vpop.f32.mrb[6].mxu1 }
 0x5b2   : > { %909 = vrot.lane.b32.xlu0 %v904_v31, %s2060_s15  ;;  %v1767_v32 = vpop.f32.mrb[7].mxu1 }
 0x5b5   : > { %v1077_v33 = vpop.f32.mrb[8].mxu1 }
 0x5b6   : > { %1082 = vrot.lane.b32.xlu1 %v1077_v33, %s2061_s22  ;;  %v1777_v34 = vpop.f32.mrb[9].mxu1 }
 0x5b9   : > { %v1250_v35 = vpop.f32.mrb[10].mxu1 }
 0x5ba   : > { %1255 = vrot.lane.b32.xlu0 %v1250_v35, %s2062_s18  ;;  %v1787_v36 = vpop.f32.mrb[11].mxu1  ;;  %s2434_s18 = scalar_lea.hbm %s2492_s13, %s1694_s14 }
 0x624   : > { %v910_v37 = vpop.permute.xlu0 %909 }
 0x625   : > { %913 = vst.msk [vmem:[#allocation3] sm:$0xff] %vm912_vm4, %v910_v37 }
 0x628   : > { %v1083_v38 = vpop.permute.xlu1 %1082 }
 0x629   : > { %1086 = vst.msk [vmem:[#allocation3] sm:$0xff] %vm1085_vm5, %v1083_v38 }
 0x62c   : > { %v1256_v39 = vpop.permute.xlu0 %1255 }
 0x62d   : > { %1259 = vst.msk [vmem:[#allocation3] sm:$0xff] %vm1258_vm6, %v1256_v39  ;;  %v2063_v39 = vmov -1.0  }
 0x634   : > { %v1260_v40 = vld [vmem:[#allocation3] sm:$0xff] }
 0x635   : > { %1797 = vmatmul.mubr.msk.f32.vlgmr.msra.gmra.mrb[6].mxu0 %vm459_vm0, %v1260_v40 }
 0x636   : > { %1826 = vmatprep.mubr.msk.f32.mxu0 %vm2047_vm1, %v2048_v13  ;;  %1849 = vmatpush3.bf16.msra.mxu0 %v1848_v4 }
 0x637   : > { %1850 = vmatprep.subr.bf16.mxu0 %v2046_v10 }
 0x63a   : > { %1852 = vmatpush3.bf16.msra.mxu0 %v1851_v7 }
 0x63b   : > { %1853 = vmatprep.subr.bf16.mxu0 %v2046_v10 }
 0x63e   : > { %1855 = vmatpush3.bf16.msra.mxu0 %v1854_v11 }
 0x63f   : > { %1856 = vmatprep.subr.bf16.mxu0 %v2046_v10 }
 0x642   : > { %1858 = vmatpush3.bf16.msra.mxu0 %v1857_v15 }
 0x708   : > { %v1341_v42 = vpop.f32.mrb[6].mxu0 }
 0x709   : > { %v1342_v43 = vadd.f32 %v1685_v41, %v1341_v42  ;;  %v1798_v44 = vpop.f32.mrb[7].mxu0 }
 0x70b   : > { %v2368_v45 = vadd.f32 %v1342_v43, %v2250_v0  ;;  %v1377_v0 = vld [vmem:[%s2488_s9 + $0x8] sm:$0xff] }
 0x70c   : > { %v1842_v52 = vpack.c.bf16 %v1377_v0, %v1376_v51 }
 0x70d   : > { %v1348_v46 = vsel %vm459_vm0, %v2368_v45, 0.0 }
 0x70e   : > { %1349 = vadd.xlane.f32.xlu1 %v1348_v46  ;;  %1843 = vmatpush3.bf16.msra.mxu1 %v1842_v52  ;;  %v1691_v46 = vld [vmem:[%s2491_s12] ss:$0 sm:$0xff] }
 0x70f   : > { %1844 = vmatprep.subr.bf16.mxu1 %v2046_v10 }
 0x712   : > { %1846 = vmatpush3.bf16.msra.mxu1 %v1845_v55 }
 0x79b   : > { %v1350_v47 = vpop.xlane.xlu1 %1349 }
 0x79c   : > { %v1351_v48 = vmul.f32 0.03125, %v1350_v47 }
 0x79e   : > { %v1352_v49 = vsub.f32 %v2368_v45, %v1351_v48 }
 0x7a0   : > { %v1353_v50 = vmul.f32 %v1352_v49, %v1352_v49 }
 0x7a2   : > { %v1354_v13 = vsel %vm459_vm0, %v1353_v50, 0.0 }
 0x7a3   : > { %1355 = vadd.xlane.f32.xlu0 %v1354_v13 }
 0x830   : > { %v1356_v56 = vpop.xlane.xlu0 %1355 }
 0x831   : > { %v1357_v57 = vmul.f32 0.03125, %v1356_v56 }
 0x833   : > { %v1358_v58 = vadd.f32 1e-06, %v1357_v57 }
 0x835   : > { %1941 = vrsqrt.f32 %v1358_v58 }
 0x83f   : > { %v1942_v59 = vpop.eup %1941 }
 0x840   : > { %v1360_v61 = vmul.f32 %v1942_v59, %v1352_v49 }
 0x842   : > { %v1367_v63 = vmul.f32 %v1687_v60, %v1360_v61 }
 0x844   : > { %v1374_v1 = vadd.f32 %v1688_v62, %v1367_v63 }
 0x846   : > { %1808 = vmatmul.mubr.msk.f32.vlgmr.msra.gmra.mrb[12].mxu1 %vm459_vm0, %v1374_v1 }
 0x919   : > { %v1455_v17 = vpop.f32.mrb[12].mxu1 }
 0x91a   : > { %v1456_v18 = vadd.f32 %v1689_v16, %v1455_v17  ;;  %v1809_v19 = vpop.f32.mrb[13].mxu1 }
 0x91c   : > { %v1460_v20 = vmul.f32 0.70710677, %v1456_v18  ;;  %v1459_v42 = vmul.f32 0.5, %v1456_v18 }
 0x91e   : > { %v1463_v21 = vand.u32 2147483647, %v1460_v20  ;;  %vm1461_vm7 = vcmp.ge.f32.partialorder %v1460_v20, 0.0 }
 0x91f   : > { %v1462_v40 = vsel %vm1461_vm7, 1.0, %v2063_v39 }
 0x920   : > { %v1464_v10 = vmul.f32 0.3275911, %v1463_v21  ;;  %v1477_v23 = vsub.f32 0.0, %v1463_v21 }
 0x922   : > { %v1465_v22 = vadd.f32 1.0, %v1464_v10  ;;  %v1478_v25 = vmul.f32 %v1477_v23, %v1463_v21 }
 0x924   : > { %1943 = vrcp.f32 %v1465_v22  ;;  %v1479_v28 = vmul.f32 1.442695, %v1478_v25 }
 0x926   : > { %1945 = vpow2.f32 %v1479_v28 }
 0x92e   : > { %v1944_v24 = vpop.eup %1943 }
 0x92f   : > { %v1468_v26 = vmul.f32 1.0614054, %v1944_v24 }
 0x930   : > { %v1946_v36 = vpop.eup %1945 }
 0x931   : > { %v1469_v27 = vadd.f32 -1.4531521, %v1468_v26 }
 0x933   : > { %v1470_v29 = vmul.f32 %v1944_v24, %v1469_v27 }
 0x935   : > { %v1471_v30 = vadd.f32 1.4214138, %v1470_v29 }
 0x937   : > { %v1472_v31 = vmul.f32 %v1944_v24, %v1471_v30 }
 0x939   : > { %v1473_v32 = vadd.f32 -0.28449672, %v1472_v31 }
 0x93b   : > { %v1474_v33 = vmul.f32 %v1944_v24, %v1473_v32 }
 0x93d   : > { %v1475_v34 = vadd.f32 0.2548296, %v1474_v33 }
 0x93f   : > { %v1476_v35 = vmul.f32 %v1944_v24, %v1475_v34 }
 0x941   : > { %v1481_v37 = vmul.f32 %v1946_v36, %v1476_v35 }
 0x943   : > { %v1482_v38 = vsub.f32 1.0, %v1481_v37 }
 0x945   : > { %v1483_v41 = vmul.f32 %v1482_v38, %v1462_v40 }
 0x947   : > { %v1484_v43 = vadd.f32 1.0, %v1483_v41 }
 0x949   : > { %v1485_v44 = vmul.f32 %v1484_v43, %v1459_v42 }
 0x94b   : > { %1827 = vmatmul.mubr.msk.f32.vlgmr.msra.gmra.mrb[8].mxu0 %vm1501_vm8, %v1485_v44 }
 0xa1e   : > { %v1571_v47 = vpop.f32.mrb[8].mxu0 }
 0xa1f   : > { %v1572_v48 = vadd.f32 %v1691_v46, %v1571_v47  ;;  %v1828_v49 = vpop.f32.mrb[9].mxu0 }
 0xa21   : > { %v1575_v50 = vadd.f32 %v1572_v48, %v2368_v45 }
 0xa23   : > { %1576 = vst.msk [vmem:[%s455_s17] sm:$0xff] %vm459_vm0, %v1575_v50 }
 0xa24   : > { %1990 = shalt.err (!%p1987_p4)
}
 0xa25   : > { %s1991_s23 = scalar_lea.hbm %s2434_s18, 128  ;;  %s1995_s17 = scalar_lea.hbm %s2492_s13, 256 }
 0xa26   : > { %p1992_p5 = scmp.ne.s32.totalorder %s2434_s18, %s1991_s23  ;;  %p1996_p0 = scmp.lt.u32.totalorder %s2434_s18, %s2492_s13 }
 0xa27   : > { %p1997_p1 = scmp.lt.u32.totalorder %s1995_s17, %s1991_s23  ;;  %p1999_p6 = scmp.lt.u32.totalorder %s1991_s23, %s2434_s18 }
 0xa28   : > { %p1993_p8 = pnand %p1992_p5, %p2509_p11 }
 0xa29   : > { %p1998_p3 = por %p1997_p1, %p1996_p0 }
 0xa2a   : > { %p1994_p9 = pneg %p1993_p8 }
 0xa2b   : > { %p2000_p12 = por %p1999_p6, %p1998_p3 }
 0xa2d   : > { %p2001_p13 = pnand %p2000_p12, %p1994_p9 }
 0xa2f   : > { %2004 = shalt.err (!%p2001_p13)
}
 0xa30   : > { %1861 = dma.vmem_to_hbm [thread:$0]  (%p2509_p11), %s2436_s19, 128, %s2434_s18, %s1578_s29  }
 0xa31 PF: > { %s2510_s24 = sld [smem:[#allocation10_spill]]  ;;  %p2511_p7 = scmp.ne.s32.totalorder %s2505_s21, 0 }
 0xa32   : > { %p2512_p10 = scmp.ge.s32.totalorder %s2043_s28, 2 }
 0xa34   : > { %p1868_p2 = pnand %p2512_p10, %p2511_p7 }
 0xa37   : > { %s1603_s16 = sand.u32 1, %s2510_s24  }
 0xa38   : > { %s1604_s27 = scalar_lea.sflag [#allocation6], %s1603_s16 }
 0xa39   : > { %2026 = dma.done.wait (!%p1868_p2), %s1604_s27, 128  }
 0xa3a   : > { %2028 = vsyncadd (!%p1868_p2), %s1604_s27, 4294967168  ;;  %s2513_s28 = sld [smem:[#allocation12_spill]]  ;;  %s2514_s30 = sld [smem:[#allocation11_spill]] }
 0xa3b   : > { %s2515_s27 = sld [smem:[#allocation13_spill]]  ;;  %s2516_s25 = smov %s2035_s26 }
 0xa40   : > { %p26_p4 = scmp.ge.s32.totalorder %s2513_s28, 4   ;;  %s2517_s26 = smov %s2514_s30 }
 0xa42   :  { %28 = sbr.rel (!%p26_p4) target bundleno = 5 (0x5), region = 117 }
 0xa49   :  { %1609 = vsyncpa [#allocation5], 1 }
 0xa4a   :  { %1611 = vsyncpa [#allocation5 + $0x1], 1 }
 0xa4b   :  { %1612 = vsyncpa [#allocation6], 1 }
 0xa4c   :  { %1614 = vsyncpa [#allocation6 + $0x1], 1 }

// kernel: tpu_custom_call.1
= control target key start
LH: loop header
LB: loop body
LE: loop exit
PB: predicated region body
PF: predicated region fallthrough
CT: control target
= control target key end

     0   :  { %18 = vsyncpa [#allocation5], 0  ;;  %s2479_s0 = inlined_call_operand.hbm [shape: f32[2,8,32], index: 0, kind: input, shape index: {}]   ;;  %s2480_s1 = inlined_call_operand.vmem [shape: f32[1,32], index: 1, kind: input, shape index: {}]   ;;  %s2481_s2 = inlined_call_operand.vmem [shape: f32[1,32], index: 2, kind: input, shape index: {}]   ;;  %s2482_s3 = inlined_call_operand.vmem [shape: f32[32,96], index: 3, kind: input, shape index: {}]   ;;  %s2483_s4 = inlined_call_operand.vmem [shape: f32[1,96], index: 4, kind: input, shape index: {}]   ;;  %s2484_s5 = inlined_call_operand.vmem [shape: f32[32,32], index: 5, kind: input, shape index: {}]   ;;  %s2485_s6 = inlined_call_operand.vmem [shape: f32[1,32], index: 6, kind: input, shape index: {}]   ;;  %s2486_s7 = inlined_call_operand.vmem [shape: f32[1,32], index: 7, kind: input, shape index: {}]   ;;  %s2487_s8 = inlined_call_operand.vmem [shape: f32[1,32], index: 8, kind: input, shape index: {}]   ;;  %s2488_s9 = inlined_call_operand.vmem [shape: f32[32,64], index: 9, kind: input, shape index: {}]   ;;  %s2489_s10 = inlined_call_operand.vmem [shape: f32[1,64], index: 10, kind: input, shape index: {}]   ;;  %s2490_s11 = inlined_call_operand.vmem [shape: f32[64,32], index: 11, kind: input, shape index: {}]   ;;  %s2491_s12 = inlined_call_operand.vmem [shape: f32[1,32], index: 12, kind: input, shape index: {}]   ;;  %s2492_s13 = inlined_call_operand.hbm [shape: f32[2,8,32], index: 13, kind: output, shape index: {}]  }
   0x1   :  { %20 = vsyncpa [#allocation5 + $0x1], 0 }
   0x2   :  { %21 = vsyncpa [#allocation6], 0 }
   0x3   :  { %23 = vsyncpa [#allocation6 + $0x1], 0  ;;  %s2135_s25 = smov 0   ;;  %s2137_s26 = smov 0  }
   0x4   :  { %s2139_s27 = smov 0   ;;  %s2141_s28 = smov 0  }
   0x5 LB: > { %2498 = sst [smem:[#allocation10_spill]] %s2031_s25  ;;  %s2156_s29 = sadd.s32 4294967295, %s2043_s28   ;;  %s2043_s28 = sphi %s2141_s28, %s2513_s28   ;;  %s2039_s27 = sphi %s2139_s27, %s2515_s27   ;;  %s2035_s26 = sphi %s2137_s26, %s2517_s26   ;;  %s2031_s25 = sphi %s2135_s25, %s2516_s25  }
   0x6   : > { %2499 = sst [smem:[#allocation11_spill]] %s2039_s27  ;;  %s1661_s30 = sadd.s32 4294967294, %s2043_s28  }
   0x7   : > { %s2160_s14 = sadd.s32 1, %s2043_s28   ;;  %s36_s15 = sadd.s32 1, %s2039_s27 }
   0x8   : > { %2500 = sst [smem:[#allocation12_spill]] %s2160_s14  ;;  %s33_s16 = ssub.s32 %s2043_s28, %s2160_s14 }
   0x9   : > { %p43_p0 = scmp.ne.s32.totalorder %s2039_s27, %s2035_s26  ;;  %p34_p1 = scmp.eq.s32.totalorder %s33_s16, 0 }
   0xa   : > { %p44_p2 = scmp.eq.s32.totalorder %s2043_s28, 0  ;;  %p49_p3 = scmp.ne.s32.totalorder %s2035_s26, %s2031_s25 }
   0xb   : > { %p50_p4 = scmp.eq.s32.totalorder %s2156_s29, 0  ;;  %p325_p7 = scmp.eq.s32.totalorder %s2156_s29, 1 }
   0xc   : > { %s2172_s17 = scalar_select %p34_p1, %s2039_s27, %s36_s15  }
   0xd   : > { %p2174_p5 = por %p44_p2, %p43_p0  ;;  %p2178_p6 = por %p50_p4, %p49_p3 }
   0xe   : > { %2501 = sst [smem:[#allocation13_spill]] %s2172_s17  ;;  %p331_p8 = scmp.eq.s32.totalorder %s1661_s30, 1 }
   0xf   : > { %p1871_p10 = scmp.lt.s32.totalorder %s2043_s28, 2  ;;  %p2185_p11 = por %p325_p7, %p43_p0 }
  0x10   : > { %p2189_p12 = por %p331_p8, %p49_p3  ;;  %s387_s22 = sand.u32 1, %s2039_s27  }
  0x11   : > { %s2504_s20 = scalar_select %p2185_p11, 1, 0 }
  0x12   : > { %s2505_s21 = scalar_select %p2189_p12, 1, 0 }
  0x13   : > { %s1665_s23 = sshll.u32 %s2043_s28, 7  ;;  %s1664_s24 = sshll.u32 %s387_s22, 3 }
  0x14   : > { %s2198_s17 = scalar_lea.hbm %s2479_s0, %s1665_s23  ;;  %s391_s30 = scalar_lea.vmem [#allocation4], %s1664_s24 }
  0x15   : > { %s398_s14 = sshll.u32 %s391_s30, 4  ;;  %p2202_p13 = pnand %p1871_p10, %p2174_p5  ;;  %s2206_s14 = int_to_ptr.vmem [resolvable:$true] %s398_s14 }
  0x16   : > { %s388_s15 = scalar_lea.sflag [#allocation5], %s387_s22  ;;  %s1947_s23 = scalar_lea.hbm %s2198_s17, 128 }
  0x17   : > { %p1948_p2 = scmp.ne.s32.totalorder %s2198_s17, %s1947_s23  ;;  %p1949_p3 = pneg %p2202_p13 }
  0x18   : > { %s1952_s16 = scalar_lea.hbm %s2479_s0, 256  ;;  %p1953_p5 = scmp.lt.u32.totalorder %s2198_s17, %s2479_s0 }
  0x19   : > { %p1950_p4 = pnand %p1949_p3, %p1948_p2  ;;  %p1954_p8 = scmp.lt.u32.totalorder %s1952_s16, %s1947_s23 }
  0x1a   : > { %p1956_p9 = scmp.lt.u32.totalorder %s1947_s23, %s2198_s17 }
  0x1b   : > { %p1951_p7 = pneg %p1950_p4  ;;  %p1955_p10 = por %p1954_p8, %p1953_p5 }
  0x1d   : > { %p1957_p0 = por %p1956_p9, %p1955_p10 }
  0x1f   : > { %p1958_p1 = pnand %p1957_p0, %p1951_p7 }
  0x21   : > { %1961 = shalt.err (!%p1958_p1)
}
  0x22   : > { %s1962_s22 = scalar_lea.vmem %s2206_s14, 128  ;;  %s2045_s18 = smov [#allocation4]  }
  0x23   : > { %p1963_p2 = scmp.ne.s32.totalorder %s2206_s14, %s1962_s22  ;;  %s1967_s24 = sshll.u32 %s2045_s18, 4  ;;  %s1968_s24 = int_to_ptr.vmem [resolvable:$false] %s1967_s24 }
  0x24   : > { %s1969_s27 = scalar_lea.vmem %s1968_s24, 256  ;;  %p1970_p11 = scmp.lt.s32.totalorder %s2206_s14, %s1968_s24 }
  0x25   : > { %p1965_p4 = pnand %p1963_p2, %p1949_p3  ;;  %p1971_p5 = scmp.lt.s32.totalorder %s1969_s27, %s1962_s22 }
  0x27   : > { %p1966_p12 = pneg %p1965_p4  ;;  %p1972_p8 = por %p1971_p5, %p1970_p11 }
  0x29   : > { %p1973_p9 = pnand %p1972_p8, %p1966_p12 }
  0x2b   : > { %1976 = shalt.err (!%p1973_p9)
}
  0x2c   : > { %1866 = dma.hbm_to_vmem [thread:$0]  (!%p2202_p13), %s2198_s17, 128, %s2206_s14, %s388_s15  }
  0x2d   : > { %p2507_p0 = scmp.lt.s32.totalorder %s2043_s28, 3  ;;  %p2508_p1 = scmp.ge.s32.totalorder %s2043_s28, 1 }
  0x2f   : > { %p404_p3 = pnand %p2508_p1, %p2507_p0 }
  0x30   : > { %s2240_s23 = sand.u32 (!%p404_p3), 1, %s2035_s26  }
  0x31   : > { %407 = sbr.rel (%p404_p3) target bundleno = 2609 (0xa31), region = 72  ;;  %s1667_s16 = sshll.u32 (!%p404_p3), %s2240_s23, 3 }
  0x32   : > { %s410_s30 = scalar_lea.sflag (!%p404_p3), [#allocation5], %s2240_s23  ;;  %s413_s25 = scalar_lea.vmem (!%p404_p3), [#allocation4], %s1667_s16 }
  0x38   : > { %2022 = dma.done.wait (%p2178_p6), %s410_s30, 128  }
  0x39   : > { %2024 = vsyncadd (%p2178_p6), %s410_s30, 4294967168  ;;  %vm459_vm0 = vcmask 261120   ;;  %v2250_v0 = vld [vmem:[%s413_s25] sm:$0xff]  ;;  %v488_v7 = vld [vmem:[%s2482_s3] sm:$0xff]  ;;  %v2046_v10 = vmov 0.0|0.0   ;;  %vm2047_vm1 = vmmov 0  }
  0x3a   : > { %v460_v1 = vsel %vm459_vm0, %v2250_v0, 0.0  ;;  %v489_v8 = vld [vmem:[%s2482_s3 + $0x8] sm:$0xff]  ;;  %v490_v9 = vld [vmem:[%s2482_s3 + $0x10] sm:$0xff]  ;;  %1829 = vmatprep.subr.bf16.mxu1 %v2046_v10  ;;  %v491_v12 = vld [vmem:[%s2482_s3 + $0x18] sm:$0xff]  ;;  %v2048_v13 = vmov 0.0   ;;  %vm572_vm2 = vcmask 785408  }
  0x3b   : > { %461 = vadd.xlane.f32.xlu0 %v460_v1  ;;  %v1830_v11 = vpack.c.bf16 %v489_v8, %v488_v7  ;;  %1745 = vmatprep.mubr.msk.f32.mxu1 %vm2047_vm1, %v2048_v13  ;;  %v1833_v14 = vpack.c.bf16 %v491_v12, %v490_v9  ;;  %v1669_v19 = vld [vmem:[%s2480_s1] ss:$0 sm:$0xff]  ;;  %s2049_s22 = smov 120   ;;  %s2050_s18 = smov 96   ;;  %vm578_vm3 = vcmask 64512   ;;  %vm912_vm4 = vcmask 130112  }
  0x3c   : > { %1758 = vmatprep.subr.mxu0 %v2048_v13  ;;  %1760 = vmatprep.mubr.msk.f32.mxu0 %vm2047_vm1, %v2048_v13  ;;  %v1670_v21 = vld [vmem:[%s2481_s2] ss:$0 sm:$0xff]  ;;  %s2051_s24 = smov 88   ;;  %s2052_s27 = smov 80   ;;  %vm1085_vm5 = vcmask 195712   ;;  %vm1258_vm6 = vcmask 261312  }
  0x3d   : > { %1831 = vmatpush3.bf16.msra.mxu1 %v1830_v11  ;;  %v1671_v24 = vld [vmem:[%s2483_s4] ss:$0 sm:$0xff]  ;;  %s2053_s30 = smov 112   ;;  %s2054_s25 = smov 72   ;;  %vm1501_vm8 = vcmask 523264  }
  0x3e   : > { %1832 = vmatprep.subr.bf16.mxu1 %v2046_v10  ;;  %s2055_s14 = smov 104   ;;  %s2056_s17 = smov 64  }
  0x3f   : > { %s2057_s19 = smov 48   ;;  %s2058_s15 = smov 40  }
  0x40   : > { %p2509_p11 = scmp.ne.s32.totalorder %s2504_s20, 0 }
  0x41   : > { %1834 = vmatpush3.bf16.msra.mxu1 %v1833_v14 }
  0x42   : > { %1748 = vmatprep.subr.mxu1 %v2048_v13 }
  0xc8   : > { %v462_v2 = vpop.xlane.xlu0 %461 }
  0xc9   : > { %v464_v3 = vmul.f32 0.03125, %v462_v2 }
  0xcb   : > { %v465_v4 = vsub.f32 %v2250_v0, %v464_v3 }
  0xcd   : > { %v466_v5 = vmul.f32 %v465_v4, %v465_v4 }
  0xcf   : > { %v467_v6 = vsel %vm459_vm0, %v466_v5, 0.0 }
  0xd0   : > { %468 = vadd.xlane.f32.xlu0 %v467_v6 }
 0x15d   : > { %v469_v15 = vpop.xlane.xlu0 %468 }
 0x15e   : > { %v470_v16 = vmul.f32 0.03125, %v469_v15 }
 0x160   : > { %v471_v17 = vadd.f32 1e-06, %v470_v16 }
 0x162   : > { %1923 = vrsqrt.f32 %v471_v17 }
 0x16c   : > { %v1924_v18 = vpop.eup %1923 }
 0x16d   : > { %v473_v20 = vmul.f32 %v1924_v18, %v465_v4 }
 0x16f   : > { %v480_v22 = vmul.f32 %v1669_v19, %v473_v20 }
 0x171   : > { %v487_v23 = vadd.f32 %v1670_v21, %v480_v22 }
 0x173   : > { %1746 = vmatmul.mubr.msk.f32.vlgmr.msra.gmra.mrb[0].mxu1 %vm459_vm0, %v487_v23 }
 0x174   : > { %1750 = vmatprep.mubr.msk.f32.mxu1 %vm2047_vm1, %v2048_v13 }
 0x246   : > { %v568_v25 = vpop.f32.mrb[0].mxu1 }
 0x247   : > { %v569_v26 = vadd.f32 %v1671_v24, %v568_v25  ;;  %v1747_v27 = vpop.f32.mrb[1].mxu1  ;;  %v1261_v25 = vld [vmem:[%s2484_s5] sm:$0xff] }
 0x249   : > { %573 = vst.msk [vmem:[#allocation2] sm:$0xff] %vm572_vm2, %v569_v26  ;;  %v1262_v26 = vld [vmem:[%s2484_s5 + $0x8] sm:$0xff] }
 0x24a   : > { %v1836_v27 = vpack.c.bf16 %v1262_v26, %v1261_v25 }
 0x250   : > { %v2288_v28 = vld [vmem:[#allocation2] sm:$0xff] }
 0x251   : > { %743 = vrot.lane.b32.xlu0 %v2288_v28, %s2049_s22  ;;  %576 = vrot.lane.b32.xlu1 %v2288_v28, %s2050_s18  ;;  %s2059_s22 = smov 56   ;;  %s2062_s18 = smov 24  }
 0x255   : > { %745 = vrot.lane.b32.xlu1 %v2288_v28, %s2051_s24 }
 0x259   : > { %918 = vrot.lane.b32.xlu1 %v2288_v28, %s2052_s27 }
 0x25d   : > { %916 = vrot.lane.b32.xlu1 %v2288_v28, %s2053_s30 }
 0x261   : > { %1091 = vrot.lane.b32.xlu1 %v2288_v28, %s2054_s25 }
 0x265   : > { %1089 = vrot.lane.b32.xlu1 %v2288_v28, %s2055_s14  ;;  %s1694_s14 = sshll.u32 %s2156_s29, 7  ;;  %s1578_s29 = scalar_lea.sflag [#allocation6], %s2240_s23 }
 0x2c3   : > { %v577_v29 = vpop.permute.xlu1 %576  ;;  %v744_v31 = vpop.permute.xlu0 %743 }
 0x2c4   : > { %1749 = vmatpush3.xpose.msk.msra.mxu1 %vm578_vm3, %v577_v29  ;;  %v1264_v29 = vld [vmem:[%s2484_s5 + $0x18] sm:$0xff] }
 0x2c5   : > { %1753 = vmatprep.subr.mxu1 %v2048_v13 }
 0x2c7   : > { %1751 = vmatmul.mubr.msk.f32.vlgmr.msra.gmra.mrb[2].mxu1 %vm578_vm3, %v2288_v28  ;;  %v746_v30 = vpop.permute.xlu1 %745 }
 0x2c8   : > { %1759 = vmatpush3.xpose.msk.msra.mxu0 %vm578_vm3, %v746_v30  ;;  %1755 = vmatprep.mubr.msk.f32.mxu1 %vm2047_vm1, %v2048_v13 }
 0x2c9   : > { %1768 = vmatprep.subr.mxu0 %v2048_v13 }
 0x2cb   : > { %1761 = vmatmul.mubr.msk.f32.vlgmr.msra.gmra.mrb[0].mxu0 %vm578_vm3, %v744_v31  ;;  %v919_v32 = vpop.permute.xlu1 %918 }
 0x2cc   : > { %1769 = vmatpush3.xpose.msk.msra.mxu0 %vm578_vm3, %v919_v32  ;;  %1770 = vmatprep.mubr.msk.f32.mxu0 %vm2047_vm1, %v2048_v13 }
 0x2cd   : > { %1778 = vmatprep.subr.mxu0 %v2048_v13 }
 0x2cf   : > { %v917_v33 = vpop.permute.xlu1 %916 }
 0x2d0   : > { %1771 = vmatmul.mubr.msk.f32.vlgmr.msra.gmra.mrb[2].mxu0 %vm578_vm3, %v917_v33 }
 0x2d1   : > { %1780 = vmatprep.mubr.msk.f32.mxu0 %vm2047_vm1, %v2048_v13 }
 0x2d3   : > { %v1092_v34 = vpop.permute.xlu1 %1091 }
 0x2d4   : > { %1779 = vmatpush3.xpose.msk.msra.mxu0 %vm578_vm3, %v1092_v34 }
 0x2d5   : > { %1835 = vmatprep.subr.bf16.mxu0 %v2046_v10 }
 0x2d7   : > { %v1090_v35 = vpop.permute.xlu1 %1089 }
 0x2d8   : > { %1781 = vmatmul.mubr.msk.f32.vlgmr.msra.gmra.mrb[4].mxu0 %vm578_vm3, %v1090_v35 }
 0x2d9   : > { %1796 = vmatprep.mubr.msk.f32.mxu0 %vm2047_vm1, %v2048_v13  ;;  %1837 = vmatpush3.bf16.msra.mxu0 %v1836_v27 }
 0x2da   : > { %1838 = vmatprep.subr.bf16.mxu0 %v2046_v10 }
 0x39a   : > { %v649_v36 = vpop.f32.mrb[2].mxu1 }
 0x39b   : > { %v1752_v37 = vpop.f32.mrb[3].mxu1  ;;  %v653_v38 = vsel %vm578_vm3, %v649_v36, -inf }
 0x39c   : > { %654 = vmax.xlane.f32.xlu1 %v653_v38 }
 0x39e   : > { %v817_v39 = vpop.f32.mrb[0].mxu0 }
 0x39f   : > { %v1762_v40 = vpop.f32.mrb[1].mxu0  ;;  %v821_v41 = vsel %vm578_vm3, %v817_v39, -inf }
 0x3a0   : > { %822 = vmax.xlane.f32.xlu0 %v821_v41  ;;  %v1685_v41 = vld [vmem:[%s2485_s6] ss:$0 sm:$0xff] }
 0x3a3   : > { %v990_v42 = vpop.f32.mrb[2].mxu0 }
 0x3a4   : > { %v1772_v43 = vpop.f32.mrb[3].mxu0  ;;  %v994_v44 = vsel %vm578_vm3, %v990_v42, -inf }
 0x3a5   : > { %995 = vmax.xlane.f32.xlu1 %v994_v44 }
 0x3ab   : > { %v1163_v45 = vpop.f32.mrb[4].mxu0 }
 0x3ac   : > { %v1782_v46 = vpop.f32.mrb[5].mxu0  ;;  %v1167_v47 = vsel %vm578_vm3, %v1163_v45, -inf }
 0x3ad   : > { %1168 = vmax.xlane.f32.xlu0 %v1167_v47 }
 0x3b6   : > { %664 = vrot.lane.b32.xlu1 %v2288_v28, %s2056_s17  ;;  %s455_s17 = scalar_lea.vmem [#allocation7], %s1667_s16  ;;  %s2064_s16 = smov [#allocation7]  }
 0x3b7   : > { %s1981_s27 = sshll.u32 %s2064_s16, 4  ;;  %s1982_s27 = int_to_ptr.vmem [resolvable:$false] %s1981_s27 }
 0x3b8   : > { %s1983_s30 = scalar_lea.vmem %s1982_s27, 256 }
 0x429   : > { %v655_v48 = vpop.xlane.xlu1 %654 }
 0x42a   : > { %v656_v49 = vsub.f32 %v649_v36, %v655_v48 }
 0x42c   : > { %v657_v50 = vmul.f32 1.442695, %v656_v49 }
 0x42d   : > { %v823_v51 = vpop.xlane.xlu0 %822 }
 0x42e   : > { %1925 = vpow2.f32 %v657_v50  ;;  %v824_v52 = vsub.f32 %v817_v39, %v823_v51  ;;  %v1376_v51 = vld [vmem:[%s2488_s9] sm:$0xff] }
 0x430   : > { %v825_v53 = vmul.f32 1.442695, %v824_v52 }
 0x432   : > { %1927 = vpow2.f32 %v825_v53  ;;  %v996_v54 = vpop.xlane.xlu1 %995  ;;  %v1378_v53 = vld [vmem:[%s2488_s9 + $0x10] sm:$0xff] }
 0x433   : > { %v997_v55 = vsub.f32 %v990_v42, %v996_v54  ;;  %v1379_v54 = vld [vmem:[%s2488_s9 + $0x18] sm:$0xff] }
 0x435   : > { %v998_v56 = vmul.f32 1.442695, %v997_v55  ;;  %v1845_v55 = vpack.c.bf16 %v1379_v54, %v1378_v53 }
 0x436   : > { %v665_v57 = vpop.permute.xlu1 %664 }
 0x437   : > { %1929 = vpow2.f32 %v998_v56  ;;  %1754 = vmatpush3.msra.mxu1 %v665_v57 }
 0x438   : > { %v1926_v58 = vpop.eup %1925  ;;  %1763 = vmatprep.subr.mxu1 %v2048_v13 }
 0x439   : > { %v659_v59 = vsel %vm578_vm3, %v1926_v58, 0.0 }
 0x43a   : > { %v1169_v60 = vpop.xlane.xlu0 %1168  ;;  %660 = vadd.xlane.f32.xlu1 %v659_v59 }
 0x43b   : > { %v1170_v61 = vsub.f32 %v1163_v45, %v1169_v60  ;;  %v1687_v60 = vld [vmem:[%s2486_s7] ss:$0 sm:$0xff] }
 0x43c   : > { %v1928_v62 = vpop.eup %1927 }
 0x43d   : > { %v1171_v63 = vmul.f32 1.442695, %v1170_v61  ;;  %v827_v1 = vsel %vm578_vm3, %v1928_v62, 0.0 }
 0x43e   : > { %828 = vadd.xlane.f32.xlu0 %v827_v1 }
 0x43f   : > { %1931 = vpow2.f32 %v1171_v63 }
 0x441   : > { %v1930_v2 = vpop.eup %1929 }
 0x442   : > { %v1000_v3 = vsel %vm578_vm3, %v1930_v2, 0.0 }
 0x443   : > { %1001 = vadd.xlane.f32.xlu1 %v1000_v3  ;;  %v1487_v3 = vld [vmem:[%s2490_s11 + $0x8] sm:$0xff] }
 0x449   : > { %v1932_v4 = vpop.eup %1931 }
 0x44a   : > { %v1173_v5 = vsel %vm578_vm3, %v1932_v4, 0.0 }
 0x44b   : > { %1174 = vadd.xlane.f32.xlu0 %v1173_v5  ;;  %v1488_v5 = vld [vmem:[%s2490_s11 + $0x10] sm:$0xff] }
 0x454   : > { %1005 = vrot.lane.b32.xlu1 %v2288_v28, %s2057_s19  ;;  %s1591_s19 = sshll.u32 %s455_s17, 4  ;;  %s2436_s19 = int_to_ptr.vmem [resolvable:$true] %s1591_s19 }
 0x455   : > { %s1977_s24 = scalar_lea.vmem %s2436_s19, 128  ;;  %p1984_p7 = scmp.lt.s32.totalorder %s2436_s19, %s1982_s27 }
 0x456   : > { %p1978_p6 = scmp.ne.s32.totalorder %s2436_s19, %s1977_s24  ;;  %p1985_p10 = scmp.lt.s32.totalorder %s1983_s30, %s1977_s24 }
 0x458   : > { %1178 = vrot.lane.b32.xlu1 %v2288_v28, %s2058_s15  ;;  %s2060_s15 = smov 8   ;;  %p1979_p12 = pnand %p1978_p6, %p2509_p11 }
 0x459   : > { %p1986_p2 = por %p1985_p10, %p1984_p7 }
 0x45a   : > { %p1980_p13 = pneg %p1979_p12 }
 0x45c   : > { %p1987_p4 = pnand %p1986_p2, %p1980_p13 }
 0x461   : > { %832 = vrot.lane.b32.xlu0 %v2288_v28, %s2059_s22  ;;  %v1263_v28 = vld [vmem:[%s2484_s5 + $0x10] sm:$0xff]  ;;  %s2061_s22 = smov 16  }
 0x462   : > { %v1839_v30 = vpack.c.bf16 %v1264_v29, %v1263_v28 }
 0x464   : > { %1840 = vmatpush3.bf16.msra.mxu0 %v1839_v30 }
 0x465   : > { %1847 = vmatprep.subr.bf16.mxu0 %v2046_v10 }
 0x4c7   : > { %v661_v6 = vpop.xlane.xlu1 %660 }
 0x4c8   : > { %1933 = vrcp.f32 %v661_v6  ;;  %v1489_v6 = vld [vmem:[%s2490_s11 + $0x18] sm:$0xff] }
 0x4cb   : > { %v829_v7 = vpop.xlane.xlu0 %828 }
 0x4cc   : > { %1935 = vrcp.f32 %v829_v7  ;;  %v1851_v7 = vpack.c.bf16 %v1489_v6, %v1488_v5 }
 0x4d0   : > { %v1002_v8 = vpop.xlane.xlu1 %1001 }
 0x4d1   : > { %1937 = vrcp.f32 %v1002_v8  ;;  %v1490_v8 = vld [vmem:[%s2490_s11 + $0x20] sm:$0xff] }
 0x4d2   : > { %v1934_v9 = vpop.eup %1933 }
 0x4d3   : > { %v663_v11 = vmul.f32 %v1934_v9, %v1926_v58  ;;  %v1491_v9 = vld [vmem:[%s2490_s11 + $0x28] sm:$0xff] }
 0x4d4   : > { %v1006_v16 = vpop.permute.xlu1 %1005 }
 0x4d5   : > { %1756 = vmatmul.mubr.msk.f32.vlgmr.msra.gmra.mrb[4].mxu1 %vm578_vm3, %v663_v11  ;;  %v1854_v11 = vpack.c.bf16 %v1491_v9, %v1490_v8 }
 0x4d6   : > { %1765 = vmatprep.mubr.msk.f32.mxu1 %vm2047_vm1, %v2048_v13  ;;  %v1936_v14 = vpop.eup %1935 }
 0x4d7   : > { %v831_v15 = vmul.f32 %v1936_v14, %v1928_v62  ;;  %v1688_v62 = vld [vmem:[%s2487_s8] ss:$0 sm:$0xff]  ;;  %v1493_v14 = vld [vmem:[%s2490_s11 + $0x38] sm:$0xff] }
 0x4d8   : > { %v1175_v12 = vpop.xlane.xlu0 %1174  ;;  %v1179_v20 = vpop.permute.xlu1 %1178 }
 0x4d9   : > { %1939 = vrcp.f32 %v1175_v12  ;;  %v1492_v12 = vld [vmem:[%s2490_s11 + $0x30] sm:$0xff] }
 0x4db   : > { %v1938_v18 = vpop.eup %1937 }
 0x4dc   : > { %v833_v17 = vpop.permute.xlu0 %832  ;;  %v1004_v19 = vmul.f32 %v1938_v18, %v1930_v2  ;;  %v1486_v2 = vld [vmem:[%s2490_s11] sm:$0xff] }
 0x4dd   : > { %1764 = vmatpush3.msra.mxu1 %v833_v17 }
 0x4de   : > { %1766 = vmatmul.mubr.msk.f32.vlgmr.msra.gmra.mrb[6].mxu1 %vm578_vm3, %v831_v15  ;;  %1773 = vmatprep.subr.mxu1 %v2048_v13  ;;  %v1857_v15 = vpack.c.bf16 %v1493_v14, %v1492_v12 }
 0x4df   : > { %1774 = vmatpush3.msra.mxu1 %v1006_v16  ;;  %1775 = vmatprep.mubr.msk.f32.mxu1 %vm2047_vm1, %v2048_v13  ;;  %v1689_v16 = vld [vmem:[%s2489_s10] ss:$0 sm:$0xff] }
 0x4e0   : > { %1783 = vmatprep.subr.mxu1 %v2048_v13 }
 0x4e2   : > { %1776 = vmatmul.mubr.msk.f32.vlgmr.msra.gmra.mrb[8].mxu1 %vm578_vm3, %v1004_v19 }
 0x4e3   : > { %v1940_v21 = vpop.eup %1939  ;;  %1784 = vmatpush3.msra.mxu1 %v1179_v20  ;;  %1785 = vmatprep.mubr.msk.f32.mxu1 %vm2047_vm1, %v2048_v13 }
 0x4e4   : > { %v1177_v22 = vmul.f32 %v1940_v21, %v1932_v4  ;;  %1841 = vmatprep.subr.bf16.mxu1 %v2046_v10  ;;  %v1848_v4 = vpack.c.bf16 %v1487_v3, %v1486_v2 }
 0x4e6   : > { %1786 = vmatmul.mubr.msk.f32.vlgmr.msra.gmra.mrb[10].mxu1 %vm578_vm3, %v1177_v22 }
 0x4e7   : > { %1807 = vmatprep.mubr.msk.f32.mxu1 %vm2047_vm1, %v2048_v13 }
 0x5a8   : > { %v736_v23 = vpop.f32.mrb[4].mxu1 }
 0x5a9   : > { %740 = vst.msk [vmem:[#allocation3] sm:$0xff] %vm578_vm3, %v736_v23  ;;  %v1757_v24 = vpop.f32.mrb[5].mxu1 }
 0x5b1   : > { %v904_v31 = vpop.f32.mrb[6].mxu1 }
 0x5b2   : > { %909 = vrot.lane.b32.xlu0 %v904_v31, %s2060_s15  ;;  %v1767_v32 = vpop.f32.mrb[7].mxu1 }
 0x5b5   : > { %v1077_v33 = vpop.f32.mrb[8].mxu1 }
 0x5b6   : > { %1082 = vrot.lane.b32.xlu1 %v1077_v33, %s2061_s22  ;;  %v1777_v34 = vpop.f32.mrb[9].mxu1 }
 0x5b9   : > { %v1250_v35 = vpop.f32.mrb[10].mxu1 }
 0x5ba   : > { %1255 = vrot.lane.b32.xlu0 %v1250_v35, %s2062_s18  ;;  %v1787_v36 = vpop.f32.mrb[11].mxu1  ;;  %s2434_s18 = scalar_lea.hbm %s2492_s13, %s1694_s14 }
 0x624   : > { %v910_v37 = vpop.permute.xlu0 %909 }
 0x625   : > { %913 = vst.msk [vmem:[#allocation3] sm:$0xff] %vm912_vm4, %v910_v37 }
 0x628   : > { %v1083_v38 = vpop.permute.xlu1 %1082 }
 0x629   : > { %1086 = vst.msk [vmem:[#allocation3] sm:$0xff] %vm1085_vm5, %v1083_v38 }
 0x62c   : > { %v1256_v39 = vpop.permute.xlu0 %1255 }
 0x62d   : > { %1259 = vst.msk [vmem:[#allocation3] sm:$0xff] %vm1258_vm6, %v1256_v39  ;;  %v2063_v39 = vmov -1.0  }
 0x634   : > { %v1260_v40 = vld [vmem:[#allocation3] sm:$0xff] }
 0x635   : > { %1797 = vmatmul.mubr.msk.f32.vlgmr.msra.gmra.mrb[6].mxu0 %vm459_vm0, %v1260_v40 }
 0x636   : > { %1826 = vmatprep.mubr.msk.f32.mxu0 %vm2047_vm1, %v2048_v13  ;;  %1849 = vmatpush3.bf16.msra.mxu0 %v1848_v4 }
 0x637   : > { %1850 = vmatprep.subr.bf16.mxu0 %v2046_v10 }
 0x63a   : > { %1852 = vmatpush3.bf16.msra.mxu0 %v1851_v7 }
 0x63b   : > { %1853 = vmatprep.subr.bf16.mxu0 %v2046_v10 }
 0x63e   : > { %1855 = vmatpush3.bf16.msra.mxu0 %v1854_v11 }
 0x63f   : > { %1856 = vmatprep.subr.bf16.mxu0 %v2046_v10 }
 0x642   : > { %1858 = vmatpush3.bf16.msra.mxu0 %v1857_v15 }
 0x708   : > { %v1341_v42 = vpop.f32.mrb[6].mxu0 }
 0x709   : > { %v1342_v43 = vadd.f32 %v1685_v41, %v1341_v42  ;;  %v1798_v44 = vpop.f32.mrb[7].mxu0 }
 0x70b   : > { %v2368_v45 = vadd.f32 %v1342_v43, %v2250_v0  ;;  %v1377_v0 = vld [vmem:[%s2488_s9 + $0x8] sm:$0xff] }
 0x70c   : > { %v1842_v52 = vpack.c.bf16 %v1377_v0, %v1376_v51 }
 0x70d   : > { %v1348_v46 = vsel %vm459_vm0, %v2368_v45, 0.0 }
 0x70e   : > { %1349 = vadd.xlane.f32.xlu1 %v1348_v46  ;;  %1843 = vmatpush3.bf16.msra.mxu1 %v1842_v52  ;;  %v1691_v46 = vld [vmem:[%s2491_s12] ss:$0 sm:$0xff] }
 0x70f   : > { %1844 = vmatprep.subr.bf16.mxu1 %v2046_v10 }
 0x712   : > { %1846 = vmatpush3.bf16.msra.mxu1 %v1845_v55 }
 0x79b   : > { %v1350_v47 = vpop.xlane.xlu1 %1349 }
 0x79c   : > { %v1351_v48 = vmul.f32 0.03125, %v1350_v47 }
 0x79e   : > { %v1352_v49 = vsub.f32 %v2368_v45, %v1351_v48 }
 0x7a0   : > { %v1353_v50 = vmul.f32 %v1352_v49, %v1352_v49 }
 0x7a2   : > { %v1354_v13 = vsel %vm459_vm0, %v1353_v50, 0.0 }
 0x7a3   : > { %1355 = vadd.xlane.f32.xlu0 %v1354_v13 }
 0x830   : > { %v1356_v56 = vpop.xlane.xlu0 %1355 }
 0x831   : > { %v1357_v57 = vmul.f32 0.03125, %v1356_v56 }
 0x833   : > { %v1358_v58 = vadd.f32 1e-06, %v1357_v57 }
 0x835   : > { %1941 = vrsqrt.f32 %v1358_v58 }
 0x83f   : > { %v1942_v59 = vpop.eup %1941 }
 0x840   : > { %v1360_v61 = vmul.f32 %v1942_v59, %v1352_v49 }
 0x842   : > { %v1367_v63 = vmul.f32 %v1687_v60, %v1360_v61 }
 0x844   : > { %v1374_v1 = vadd.f32 %v1688_v62, %v1367_v63 }
 0x846   : > { %1808 = vmatmul.mubr.msk.f32.vlgmr.msra.gmra.mrb[12].mxu1 %vm459_vm0, %v1374_v1 }
 0x919   : > { %v1455_v17 = vpop.f32.mrb[12].mxu1 }
 0x91a   : > { %v1456_v18 = vadd.f32 %v1689_v16, %v1455_v17  ;;  %v1809_v19 = vpop.f32.mrb[13].mxu1 }
 0x91c   : > { %v1460_v20 = vmul.f32 0.70710677, %v1456_v18  ;;  %v1459_v42 = vmul.f32 0.5, %v1456_v18 }
 0x91e   : > { %v1463_v21 = vand.u32 2147483647, %v1460_v20  ;;  %vm1461_vm7 = vcmp.ge.f32.partialorder %v1460_v20, 0.0 }
 0x91f   : > { %v1462_v40 = vsel %vm1461_vm7, 1.0, %v2063_v39 }
 0x920   : > { %v1464_v10 = vmul.f32 0.3275911, %v1463_v21  ;;  %v1477_v23 = vsub.f32 0.0, %v1463_v21 }
 0x922   : > { %v1465_v22 = vadd.f32 1.0, %v1464_v10  ;;  %v1478_v25 = vmul.f32 %v1477_v23, %v1463_v21 }
 0x924   : > { %1943 = vrcp.f32 %v1465_v22  ;;  %v1479_v28 = vmul.f32 1.442695, %v1478_v25 }
 0x926   : > { %1945 = vpow2.f32 %v1479_v28 }
 0x92e   : > { %v1944_v24 = vpop.eup %1943 }
 0x92f   : > { %v1468_v26 = vmul.f32 1.0614054, %v1944_v24 }
 0x930   : > { %v1946_v36 = vpop.eup %1945 }
 0x931   : > { %v1469_v27 = vadd.f32 -1.4531521, %v1468_v26 }
 0x933   : > { %v1470_v29 = vmul.f32 %v1944_v24, %v1469_v27 }
 0x935   : > { %v1471_v30 = vadd.f32 1.4214138, %v1470_v29 }
 0x937   : > { %v1472_v31 = vmul.f32 %v1944_v24, %v1471_v30 }
 0x939   : > { %v1473_v32 = vadd.f32 -0.28449672, %v1472_v31 }
 0x93b   : > { %v1474_v33 = vmul.f32 %v1944_v24, %v1473_v32 }
 0x93d   : > { %v1475_v34 = vadd.f32 0.2548296, %v1474_v33 }
 0x93f   : > { %v1476_v35 = vmul.f32 %v1944_v24, %v1475_v34 }
 0x941   : > { %v1481_v37 = vmul.f32 %v1946_v36, %v1476_v35 }
 0x943   : > { %v1482_v38 = vsub.f32 1.0, %v1481_v37 }
 0x945   : > { %v1483_v41 = vmul.f32 %v1482_v38, %v1462_v40 }
 0x947   : > { %v1484_v43 = vadd.f32 1.0, %v1483_v41 }
 0x949   : > { %v1485_v44 = vmul.f32 %v1484_v43, %v1459_v42 }
 0x94b   : > { %1827 = vmatmul.mubr.msk.f32.vlgmr.msra.gmra.mrb[8].mxu0 %vm1501_vm8, %v1485_v44 }
 0xa1e   : > { %v1571_v47 = vpop.f32.mrb[8].mxu0 }
 0xa1f   : > { %v1572_v48 = vadd.f32 %v1691_v46, %v1571_v47  ;;  %v1828_v49 = vpop.f32.mrb[9].mxu0 }
 0xa21   : > { %v1575_v50 = vadd.f32 %v1572_v48, %v2368_v45 }
 0xa23   : > { %1576 = vst.msk [vmem:[%s455_s17] sm:$0xff] %vm459_vm0, %v1575_v50 }
 0xa24   : > { %1990 = shalt.err (!%p1987_p4)
}
 0xa25   : > { %s1991_s23 = scalar_lea.hbm %s2434_s18, 128  ;;  %s1995_s17 = scalar_lea.hbm %s2492_s13, 256 }
 0xa26   : > { %p1992_p5 = scmp.ne.s32.totalorder %s2434_s18, %s1991_s23  ;;  %p1996_p0 = scmp.lt.u32.totalorder %s2434_s18, %s2492_s13 }
 0xa27   : > { %p1997_p1 = scmp.lt.u32.totalorder %s1995_s17, %s1991_s23  ;;  %p1999_p6 = scmp.lt.u32.totalorder %s1991_s23, %s2434_s18 }
 0xa28   : > { %p1993_p8 = pnand %p1992_p5, %p2509_p11 }
 0xa29   : > { %p1998_p3 = por %p1997_p1, %p1996_p0 }
 0xa2a   : > { %p1994_p9 = pneg %p1993_p8 }
 0xa2b   : > { %p2000_p12 = por %p1999_p6, %p1998_p3 }
 0xa2d   : > { %p2001_p13 = pnand %p2000_p12, %p1994_p9 }
 0xa2f   : > { %2004 = shalt.err (!%p2001_p13)
}
 0xa30   : > { %1861 = dma.vmem_to_hbm [thread:$0]  (%p2509_p11), %s2436_s19, 128, %s2434_s18, %s1578_s29  }
 0xa31 PF: > { %s2510_s24 = sld [smem:[#allocation10_spill]]  ;;  %p2511_p7 = scmp.ne.s32.totalorder %s2505_s21, 0 }
 0xa32   : > { %p2512_p10 = scmp.ge.s32.totalorder %s2043_s28, 2 }
 0xa34   : > { %p1868_p2 = pnand %p2512_p10, %p2511_p7 }
 0xa37   : > { %s1603_s16 = sand.u32 1, %s2510_s24  }
 0xa38   : > { %s1604_s27 = scalar_lea.sflag [#allocation6], %s1603_s16 }
 0xa39   : > { %2026 = dma.done.wait (!%p1868_p2), %s1604_s27, 128  }
 0xa3a   : > { %2028 = vsyncadd (!%p1868_p2), %s1604_s27, 4294967168  ;;  %s2513_s28 = sld [smem:[#allocation12_spill]]  ;;  %s2514_s30 = sld [smem:[#allocation11_spill]] }
 0xa3b   : > { %s2515_s27 = sld [smem:[#allocation13_spill]]  ;;  %s2516_s25 = smov %s2035_s26 }
 0xa40   : > { %p26_p4 = scmp.ge.s32.totalorder %s2513_s28, 4   ;;  %s2517_s26 = smov %s2514_s30 }
 0xa42   :  { %28 = sbr.rel (!%p26_p4) target bundleno = 5 (0x5), region = 117 }
 0xa49   :  { %1609 = vsyncpa [#allocation5], 1 }
 0xa4a   :  { %1611 = vsyncpa [#allocation5 + $0x1], 1 }
 0xa4b   :  { %1612 = vsyncpa [#allocation6], 1 }
 0xa4c   :  { %1614 = vsyncpa [#allocation6 + $0x1], 1 }

</bundles_post_ra>
